<compile_context>
chip_gen: v7x
topology: tpu7x:2x2x1
jax: 0.10.0
libtpu: 0.0.40
codegen_flags: <defaults>
</compile_context>

<pallas_src>
import functools

import jax
import jax.numpy as jnp
from jax import lax
from jax.experimental import pallas as pl
from jax.experimental.pallas import tpu as pltpu

# ------------------------- synthetic CLIP-text config -----------------------
B = 2          # batch
S = 8          # max_length (sequence length)
D = 32         # hidden size
H = 4          # attention heads
HD = D // H    # head dim
F = 4 * D      # MLP intermediate size
L = 2          # transformer layers
VOCAB = 64     # vocab size
EPS = 1e-5

W_COLS = 4 * D                 # lane width of both slabs (=128 here, = F)
W_ROWS = 2 * D + F             # rows of the weight slab: attn | fc1 | fc2
ATTN_R0, FC1_R0, FC2_R0 = 0, D, 2 * D
# vector-slab row layout (final-LN folded in -> one fewer input stream)
(R_LN1_W, R_LN1_B, R_LN2_W, R_LN2_B,
 R_BQKVO, R_B1, R_B2, R_LNF_W, R_LNF_B) = range(9)
V_ROWS = 16                    # rounded to a sublane-tile multiple

assert F == 4 * D and W_COLS == 128


def _layernorm(x, w, b):
    mu = jnp.mean(x, axis=-1, keepdims=True)
    var = jnp.mean((x - mu) ** 2, axis=-1, keepdims=True)
    return (x - mu) * lax.rsqrt(var + EPS) * w + b


def _quick_gelu(x):
    # CLIP quick_gelu: x * sigmoid(1.702 x); exp + exact reciprocal on the EUP.
    return x * pl.reciprocal(1.0 + jnp.exp(-1.702 * x))


def clip_text_kernel(layer_axis, x_ref, w_ref, v_ref, out_ref):
    """One grid step == one transformer layer (for one block of batch rows).

    out_ref (constant index over the layer axis) holds the f32 residual stream
    as a (M, D) slab with M = Bblk * S.
    """
    layer = pl.program_id(layer_axis)
    last = pl.num_programs(layer_axis) - 1

    @pl.when(layer == 0)
    def _init():
        out_ref[...] = x_ref[...]          # f32 residual init = tok+pos embed

    M = out_ref.shape[0]
    Bblk = M // S
    h = out_ref[...]                       # (M, D) f32 residual

    # causal attention bias, built inline (cheap VPU ops, no scratch buffer)
    row = lax.broadcasted_iota(jnp.int32, (S, S), 0)
    col = lax.broadcasted_iota(jnp.int32, (S, S), 1)
    bias = jnp.where(row >= col, 0.0, -1e9).astype(jnp.float32)

    # ---------------- self-attention block ----------------
    x1 = _layernorm(h, v_ref[0, R_LN1_W:R_LN1_W + 1, 0:D],
                    v_ref[0, R_LN1_B:R_LN1_B + 1, 0:D])           # (M, D) f32

    # Fused projection: one (M,D)@(D,4D) bf16 matmul, f32 accumulation.
    # Columns are [q | k | v | x1@wo]; 4D == 128 lanes so the last D columns
    # occupy the same single MXU tile (they are discarded, see TODO above).
    qkvo = jnp.dot(x1.astype(jnp.bfloat16), w_ref[0, ATTN_R0:ATTN_R0 + D, :],
                   preferred_element_type=jnp.float32) \
           + v_ref[0, R_BQKVO:R_BQKVO + 1, :]                      # (M, 4D) f32

    scale = jnp.float32(1.0 / (HD ** 0.5))

    o_parts = []
    for b in range(Bblk):                           # static unroll (Bblk<=2)
        qkv_b = qkvo[b * S:(b + 1) * S, :]          # (S, 4D), aligned slice
        heads = []
        for hh in range(H):                         # static unroll, no H-loop concat into wo
            qh = (qkv_b[:, hh * HD:(hh + 1) * HD] * scale).astype(jnp.bfloat16)
            kh = qkv_b[:, D + hh * HD:D + (hh + 1) * HD].astype(jnp.bfloat16)
            vh = qkv_b[:, 2 * D + hh * HD:2 * D + (hh + 1) * HD].astype(jnp.bfloat16)
            # bf16 score / PV matmuls (single-pass MXU), f32 accumulation
            s = jnp.einsum('qd,kd->qk', qh, kh,
                           preferred_element_type=jnp.float32) + bias
            s = s - jnp.max(s, axis=-1, keepdims=True)
            p = jnp.exp(s)
            p = p * pl.reciprocal(jnp.sum(p, axis=-1, keepdims=True))  # exact
            heads.append(jnp.dot(p.astype(jnp.bfloat16), vh,
                                 preferred_element_type=jnp.float32))  # (S, HD)
        o_parts.append(jnp.concatenate(heads, axis=-1))                # (S, D)
    o = jnp.concatenate(o_parts, axis=0)                               # (M, D)

    # single out-projection matmul (1 MXU push instead of H K=HD pushes)
    attn = jnp.dot(o.astype(jnp.bfloat16),
                   w_ref[0, ATTN_R0:ATTN_R0 + D, 3 * D:4 * D],
                   preferred_element_type=jnp.float32)
    h = h + attn + v_ref[0, R_BQKVO:R_BQKVO + 1, 3 * D:4 * D]          # + bo

    # ---------------- MLP block ----------------
    x2 = _layernorm(h, v_ref[0, R_LN2_W:R_LN2_W + 1, 0:D],
                    v_ref[0, R_LN2_B:R_LN2_B + 1, 0:D])
    u = jnp.dot(x2.astype(jnp.bfloat16), w_ref[0, FC1_R0:FC1_R0 + D, :],
                preferred_element_type=jnp.float32) \
        + v_ref[0, R_B1:R_B1 + 1, :]                                   # (M, F)
    u = _quick_gelu(u)
    h = h + jnp.dot(u.astype(jnp.bfloat16), w_ref[0, FC2_R0:FC2_R0 + F, 0:D],
                    preferred_element_type=jnp.float32) \
        + v_ref[0, R_B2:R_B2 + 1, 0:D]

    # exactly one store per layer step
    @pl.when(layer < last)
    def _store():
        out_ref[...] = h

    @pl.when(layer == last)
    def _final():                     # final LayerNorm -> last_hidden_state
        out_ref[...] = _layernorm(h, v_ref[0, R_LNF_W:R_LNF_W + 1, 0:D],
                                  v_ref[0, R_LNF_B:R_LNF_B + 1, 0:D])


# --------------------- host-side parameter packing --------------------------
def pack_params(p):
    """Collapse all params into two lane-dense slabs (layout plumbing only)."""
    # weight slab (L, 2D+F, 128), bf16: rows [0:D)=[wq|wk|wv|wo], [D:2D)=w1,
    # [2D:2D+F)=w2 zero-padded to 128 lanes.
    w_attn = jnp.concatenate([p["wq"], p["wk"], p["wv"], p["wo"]], axis=-1)
    w2_pad = jnp.pad(p["w2"], ((0, 0), (0, 0), (0, W_COLS - D)))
    w_slab = jnp.concatenate([w_attn, p["w1"], w2_pad],
                             axis=1).astype(jnp.bfloat16)            # (L,192,128)

    def row(v):                                   # (L, n) -> (L, 1, 128)
        return jnp.pad(v, ((0, 0), (0, W_COLS - v.shape[-1])))[:, None, :]

    lnf_w = jnp.broadcast_to(p["lnf_w"][None, :], (L, D))
    lnf_b = jnp.broadcast_to(p["lnf_b"][None, :], (L, D))
    rows = [
        row(p["ln1_w"]), row(p["ln1_b"]), row(p["ln2_w"]), row(p["ln2_b"]),
        row(jnp.concatenate([p["bq"], p["bk"], p["bv"], p["bo"]], axis=-1)),
        row(p["b1"]), row(p["b2"]),
        row(lnf_w), row(lnf_b),                    # final LN folded in
    ]
    pad = jnp.zeros((L, V_ROWS - len(rows), W_COLS), jnp.float32)
    v_slab = jnp.concatenate(rows + [pad], axis=1).astype(jnp.float32)  # (L,16,128)
    return w_slab, v_slab


def frozen_clip_embedder_forward(x_emb, params, split_batch=None):
    """x_emb: (B, S, D) token+position embeddings. Returns last_hidden_state."""
    if split_batch is None:
        # v7x has 2 TensorCores -> keep the batch axis "parallel"; on
        # single-TC chips (v5e/v6e) collapse batch into the block instead.
        try:
            split_batch = "v7" in jax.devices()[0].device_kind.lower()
        except Exception:  # pragma: no cover - defensive
            split_batch = False

    w_slab, v_slab = pack_params(params)
    x2d = x_emb.reshape(B * S, D).astype(jnp.float32)

    if split_batch:
        grid = (B, L)
        layer_axis = 1
        x_spec = pl.BlockSpec((S, D), lambda b, l: (b, 0))
        w_spec = pl.BlockSpec((1, W_ROWS, W_COLS), lambda b, l: (l, 0, 0))
        v_spec = pl.BlockSpec((1, V_ROWS, W_COLS), lambda b, l: (l, 0, 0))
        semantics = ("parallel", "arbitrary")
    else:
        grid = (L,)
        layer_axis = 0
        x_spec = pl.BlockSpec((B * S, D), lambda l: (0, 0))
        w_spec = pl.BlockSpec((1, W_ROWS, W_COLS), lambda l: (l, 0, 0))
        v_spec = pl.BlockSpec((1, V_ROWS, W_COLS), lambda l: (l, 0, 0))
        semantics = ("arbitrary",)

    grid_spec = pltpu.PrefetchScalarGridSpec(
        num_scalar_prefetch=0,
        grid=grid,
        in_specs=[x_spec, w_spec, v_spec],
        out_specs=x_spec,                          # residual / output slab
    )

    fn = pl.pallas_call(
        functools.partial(clip_text_kernel, layer_axis),
        out_shape=jax.ShapeDtypeStruct((B * S, D), jnp.float32),
        grid_spec=grid_spec,
        compiler_params=pltpu.CompilerParams(
            dimension_semantics=semantics,
            # explicit VMEM budget (re-derive at real CLIP sizes; on v7x the
            # per-layer slab must also be row-tiled, see TODO at top)
            vmem_limit_bytes=32 * 1024 * 1024,
        ),
    )
    return fn(x2d, w_slab, v_slab).reshape(B, S, D)


# --------------------------- pure-JAX f32 reference --------------------------
def _layernorm_ref(x, w, b):
    mu = jnp.mean(x, axis=-1, keepdims=True)
    var = jnp.mean((x - mu) ** 2, axis=-1, keepdims=True)
    return (x - mu) * lax.rsqrt(var + EPS) * w + b


def _reference(x_emb, p):
    h = x_emb.astype(jnp.float32)
    row = lax.broadcasted_iota(jnp.int32, (S, S), 0)
    col = lax.broadcasted_iota(jnp.int32, (S, S), 1)
    causal = jnp.where(row >= col, 0.0, -1e9).astype(jnp.float32)
    for l in range(L):
        x1 = _layernorm_ref(h, p["ln1_w"][l], p["ln1_b"][l])
        q = x1 @ p["wq"][l] + p["bq"][l]
        k = x1 @ p["wk"][l] + p["bk"][l]
        v = x1 @ p["wv"][l] + p["bv"][l]
        qh = q.reshape(B, S, H, HD).transpose(0, 2, 1, 3) * (1.0 / HD ** 0.5)
        kh = k.reshape(B, S, H, HD).transpose(0, 2, 1, 3)
        vh = v.reshape(B, S, H, HD).transpose(0, 2, 1, 3)
        s = jnp.einsum('bhqd,bhkd->bhqk', qh, kh) + causal
        a = jax.nn.softmax(s, axis=-1)
        o = jnp.einsum('bhqk,bhkd->bhqd', a, vh).transpose(0, 2, 1, 3).reshape(B, S, D)
        h = h + (o @ p["wo"][l] + p["bo"][l])
        x2 = _layernorm_ref(h, p["ln2_w"][l], p["ln2_b"][l])
        u = x2 @ p["w1"][l] + p["b1"][l]
        u = u * (1.0 / (1.0 + jnp.exp(-1.702 * u)))
        h = h + (u @ p["w2"][l] + p["b2"][l])
    return _layernorm_ref(h, p["lnf_w"], p["lnf_b"])


# ------------------------------- main ----------------------------------------
if __name__ == "__main__":
    key = jax.random.PRNGKey(0)
    keys = jax.random.split(key, 16)

    def nrm(k, shape, std=0.02):
        return (jax.random.normal(k, shape, jnp.float32) * std).astype(jnp.float32)

    params = {
        "ln1_w": jnp.ones((L, D), jnp.float32),
        "ln1_b": jnp.zeros((L, D), jnp.float32),
        "wq": nrm(keys[0], (L, D, D)), "bq": nrm(keys[1], (L, D)),
        "wk": nrm(keys[2], (L, D, D)), "bk": nrm(keys[3], (L, D)),
        "wv": nrm(keys[4], (L, D, D)), "bv": nrm(keys[5], (L, D)),
        "wo": nrm(keys[6], (L, D, D)), "bo": nrm(keys[7], (L, D)),
        "ln2_w": jnp.ones((L, D), jnp.float32),
        "ln2_b": jnp.zeros((L, D), jnp.float32),
        "w1": nrm(keys[8], (L, D, F)), "b1": nrm(keys[9], (L, F)),
        "w2": nrm(keys[10], (L, F, D)), "b2": nrm(keys[11], (L, D)),
        "lnf_w": jnp.ones((D,), jnp.float32),
        "lnf_b": jnp.zeros((D,), jnp.float32),
    }

    # "tokenized text": deterministic token ids (stands in for CLIPTokenizer)
    tokens = jax.random.randint(keys[12], (B, S), 0, VOCAB, dtype=jnp.int32)
    tok_table = nrm(keys[13], (VOCAB, D))
    pos_table = nrm(keys[14], (S, D))
    x_emb = tok_table[tokens] + pos_table[None, :, :]      # (B, S, D) embeddings

    z = frozen_clip_embedder_forward(x_emb, params)        # last_hidden_state
    z = jax.block_until_ready(z)

    z_ref = _reference(x_emb, params)
    assert z.shape == (B, S, D)
    # tolerance accounts for bf16 matmul inputs (autocast semantics).
    err = float(jnp.max(jnp.abs(z - z_ref)))
    assert jnp.allclose(z, z_ref, atol=3e-2, rtol=3e-2), f"mismatch vs reference: {err}"

    print("KERNEL_OK")
</pallas_src>

<mosaic_0001>
module attributes {stable_mosaic.version = 11 : i64} {
  func.func @clip_text_kernel(%arg0: i32, %arg1: memref<16x32xf32, #tpu.memory_space<vmem>>, %arg2: memref<1x192x128xbf16, #tpu.memory_space<vmem>>, %arg3: memref<1x16x128xf32, #tpu.memory_space<vmem>>, %arg4: memref<16x32xf32, #tpu.memory_space<vmem>>) attributes {dimension_semantics = [#tpu.dimension_semantics<arbitrary>], iteration_bounds = array<i64: 2>, scalar_prefetch = 0 : i64, scratch_operands = 0 : i64, tpu.core_type = #tpu.core_type<tc>, window_params = [{pipeline_mode = #tpu.pipeline_mode<synchronous>, transform_indices = @transform_0, window_bounds = array<i64: 16, 32>}, {transform_indices = @transform_1, window_bounds = array<i64: 1, 192, 128>}, {transform_indices = @transform_2, window_bounds = array<i64: 1, 16, 128>}, {pipeline_mode = #tpu.pipeline_mode<synchronous>, transform_indices = @transform_3, window_bounds = array<i64: 16, 32>}]} {
    %c0_i32 = arith.constant 0 : i32
    %0 = arith.cmpi eq, %arg0, %c0_i32 : i32
    %1 = arith.extui %0 : i1 to i32
    %c0_i32_0 = arith.constant 0 : i32
    %2 = arith.cmpi ne, %1, %c0_i32_0 : i32
    scf.if %2 {
      %c0_89 = arith.constant 0 : index
      %c0_90 = arith.constant 0 : index
      %290 = vector.load %arg1[%c0_89, %c0_90] : memref<16x32xf32, #tpu.memory_space<vmem>>, vector<16x32xf32>
      %c0_91 = arith.constant 0 : index
      %c0_92 = arith.constant 0 : index
      %291 = vector.load %arg4[%c0_91, %c0_92] : memref<16x32xf32, #tpu.memory_space<vmem>>, vector<16x32xf32>
      tpu.vector_store %arg4[%c0_91, %c0_92], %290 {strides = array<i32>} : memref<16x32xf32, #tpu.memory_space<vmem>>, vector<16x32xf32>,
    } else {
    }
    %c0 = arith.constant 0 : index
    %c0_1 = arith.constant 0 : index
    %3 = vector.load %arg4[%c0, %c0_1] : memref<16x32xf32, #tpu.memory_space<vmem>>, vector<16x32xf32>
    %4 = tpu.iota {dimensions = array<i32: 0>} : vector<8x8xi32>
    %5 = tpu.iota {dimensions = array<i32: 1>} : vector<8x8xi32>
    %6 = arith.cmpi sge, %4, %5 : vector<8x8xi32>
    %cst = arith.constant 0.000000e+00 : f32
    %cst_2 = arith.constant -1.000000e+09 : f32
    %7 = vector.broadcast %cst : f32 to vector<8x8xf32>
    %8 = vector.broadcast %cst_2 : f32 to vector<8x8xf32>
    %9 = arith.select %6, %7, %8 : vector<8x8xi1>, vector<8x8xf32>
    %c0_3 = arith.constant 0 : index
    %c0_4 = arith.constant 0 : index
    %c0_5 = arith.constant 0 : index
    %10 = vector.load %arg3[%c0_3, %c0_4, %c0_5] : memref<1x16x128xf32, #tpu.memory_space<vmem>>, vector<1x1x32xf32>
    %11 = vector.shape_cast %10 : vector<1x1x32xf32> to vector<1x32xf32>
    %c0_6 = arith.constant 0 : index
    %c1 = arith.constant 1 : index
    %c0_7 = arith.constant 0 : index
    %12 = vector.load %arg3[%c0_6, %c1, %c0_7] : memref<1x16x128xf32, #tpu.memory_space<vmem>>, vector<1x1x32xf32>
    %13 = vector.shape_cast %12 : vector<1x1x32xf32> to vector<1x32xf32>
    %cst_8 = arith.constant dense<0.000000e+00> : vector<16xf32>
    %14 = vector.multi_reduction <add>, %3, %cst_8 [1] : vector<16x32xf32> to vector<16xf32>
    %15 = vector.shape_cast %14 : vector<16xf32> to vector<16x1xf32>
    %cst_9 = arith.constant 3.200000e+01 : f32
    %16 = vector.broadcast %cst_9 : f32 to vector<16x1xf32>
    %17 = arith.divf %15, %16 : vector<16x1xf32>
    %18 = vector.broadcast %17 : vector<16x1xf32> to vector<16x32xf32>
    %19 = arith.subf %3, %18 : vector<16x32xf32>
    %20 = arith.mulf %19, %19 : vector<16x32xf32>
    %cst_10 = arith.constant dense<0.000000e+00> : vector<16xf32>
    %21 = vector.multi_reduction <add>, %20, %cst_10 [1] : vector<16x32xf32> to vector<16xf32>
    %22 = vector.shape_cast %21 : vector<16xf32> to vector<16x1xf32>
    %cst_11 = arith.constant 3.200000e+01 : f32
    %23 = vector.broadcast %cst_11 : f32 to vector<16x1xf32>
    %24 = arith.divf %22, %23 : vector<16x1xf32>
    %25 = vector.broadcast %17 : vector<16x1xf32> to vector<16x32xf32>
    %26 = arith.subf %3, %25 : vector<16x32xf32>
    %cst_12 = arith.constant 9.99999974E-6 : f32
    %27 = vector.broadcast %cst_12 : f32 to vector<16x1xf32>
    %28 = arith.addf %24, %27 : vector<16x1xf32>
    %29 = math.rsqrt %28 : vector<16x1xf32>
    %30 = vector.broadcast %29 : vector<16x1xf32> to vector<16x32xf32>
    %31 = arith.mulf %26, %30 : vector<16x32xf32>
    %32 = vector.broadcast %11 : vector<1x32xf32> to vector<16x32xf32>
    %33 = arith.mulf %31, %32 : vector<16x32xf32>
    %34 = vector.broadcast %13 : vector<1x32xf32> to vector<16x32xf32>
    %35 = arith.addf %33, %34 : vector<16x32xf32>
    %36 = arith.truncf %35 : vector<16x32xf32> to vector<16x32xbf16>
    %c0_13 = arith.constant 0 : index
    %c0_14 = arith.constant 0 : index
    %c0_15 = arith.constant 0 : index
    %37 = vector.load %arg2[%c0_13, %c0_14, %c0_15] : memref<1x192x128xbf16, #tpu.memory_space<vmem>>, vector<1x32x128xbf16>
    %38 = vector.shape_cast %37 : vector<1x32x128xbf16> to vector<32x128xbf16>
    %cst_16 = arith.constant dense<0.000000e+00> : vector<16x128xf32>
    %39 = tpu.matmul %36, %38, %cst_16 {dimension_numbers = #tpu.dot_dimension_numbers<[1], [0], [0], [1], [0, 0, 1, 1], [], []>} : vector<16x32xbf16>, vector<32x128xbf16>, vector<16x128xf32> -> vector<16x128xf32>
    %c0_17 = arith.constant 0 : index
    %c4 = arith.constant 4 : index
    %c0_18 = arith.constant 0 : index
    %40 = vector.load %arg3[%c0_17, %c4, %c0_18] : memref<1x16x128xf32, #tpu.memory_space<vmem>>, vector<1x1x128xf32>
    %41 = vector.shape_cast %40 : vector<1x1x128xf32> to vector<1x128xf32>
    %42 = vector.broadcast %41 : vector<1x128xf32> to vector<16x128xf32>
    %43 = arith.addf %39, %42 : vector<16x128xf32>
    %44 = vector.extract_strided_slice %43 {offsets = [0, 0], sizes = [8, 128], strides = [1, 1]} : vector<16x128xf32> to vector<8x128xf32>
    %45 = vector.extract_strided_slice %44 {offsets = [0, 0], sizes = [8, 8], strides = [1, 1]} : vector<8x128xf32> to vector<8x8xf32>
    %cst_19 = arith.constant 0.353553385 : f32
    %46 = vector.broadcast %cst_19 : f32 to vector<8x8xf32>
    %47 = arith.mulf %45, %46 : vector<8x8xf32>
    %48 = arith.truncf %47 : vector<8x8xf32> to vector<8x8xbf16>
    %49 = vector.extract_strided_slice %44 {offsets = [0, 32], sizes = [8, 8], strides = [1, 1]} : vector<8x128xf32> to vector<8x8xf32>
    %50 = arith.truncf %49 : vector<8x8xf32> to vector<8x8xbf16>
    %51 = vector.extract_strided_slice %44 {offsets = [0, 64], sizes = [8, 8], strides = [1, 1]} : vector<8x128xf32> to vector<8x8xf32>
    %52 = arith.truncf %51 : vector<8x8xf32> to vector<8x8xbf16>
    "tpu.trace_start"() <{level = 10 : i32, message = "qd,kd->qk"}> : () -> ()
    %cst_20 = arith.constant dense<0.000000e+00> : vector<8x8xf32>
    %53 = tpu.matmul %48, %50, %cst_20 {dimension_numbers = #tpu.dot_dimension_numbers<[1], [1], [0], [0], [0, 0, 1, 0], [], []>} : vector<8x8xbf16>, vector<8x8xbf16>, vector<8x8xf32> -> vector<8x8xf32>
    "tpu.trace_stop"() : () -> ()
    %54 = arith.addf %53, %9 : vector<8x8xf32>
    %cst_21 = arith.constant dense<0xFF800000> : vector<8xf32>
    %55 = vector.multi_reduction <maximumf>, %54, %cst_21 [1] : vector<8x8xf32> to vector<8xf32>
    %56 = vector.shape_cast %55 : vector<8xf32> to vector<8x1xf32>
    %57 = vector.broadcast %56 : vector<8x1xf32> to vector<8x8xf32>
    %58 = arith.subf %54, %57 : vector<8x8xf32>
    %59 = math.exp %58 : vector<8x8xf32>
    %cst_22 = arith.constant dense<0.000000e+00> : vector<8xf32>
    %60 = vector.multi_reduction <add>, %59, %cst_22 [1] : vector<8x8xf32> to vector<8xf32>
    %61 = vector.shape_cast %60 : vector<8xf32> to vector<8x1xf32>
    %62 = tpu.reciprocal %61 : vector<8x1xf32> -> vector<8x1xf32>
    %63 = vector.broadcast %62 : vector<8x1xf32> to vector<8x8xf32>
    %64 = arith.mulf %59, %63 : vector<8x8xf32>
    %65 = arith.truncf %64 : vector<8x8xf32> to vector<8x8xbf16>
    %cst_23 = arith.constant dense<0.000000e+00> : vector<8x8xf32>
    %66 = tpu.matmul %65, %52, %cst_23 {dimension_numbers = #tpu.dot_dimension_numbers<[1], [0], [0], [1], [0, 0, 1, 1], [], []>} : vector<8x8xbf16>, vector<8x8xbf16>, vector<8x8xf32> -> vector<8x8xf32>
    %67 = vector.extract_strided_slice %44 {offsets = [0, 8], sizes = [8, 8], strides = [1, 1]} : vector<8x128xf32> to vector<8x8xf32>
    %cst_24 = arith.constant 0.353553385 : f32
    %68 = vector.broadcast %cst_24 : f32 to vector<8x8xf32>
    %69 = arith.mulf %67, %68 : vector<8x8xf32>
    %70 = arith.truncf %69 : vector<8x8xf32> to vector<8x8xbf16>
    %71 = vector.extract_strided_slice %44 {offsets = [0, 40], sizes = [8, 8], strides = [1, 1]} : vector<8x128xf32> to vector<8x8xf32>
    %72 = arith.truncf %71 : vector<8x8xf32> to vector<8x8xbf16>
    %73 = vector.extract_strided_slice %44 {offsets = [0, 72], sizes = [8, 8], strides = [1, 1]} : vector<8x128xf32> to vector<8x8xf32>
    %74 = arith.truncf %73 : vector<8x8xf32> to vector<8x8xbf16>
    "tpu.trace_start"() <{level = 10 : i32, message = "qd,kd->qk"}> : () -> ()
    %cst_25 = arith.constant dense<0.000000e+00> : vector<8x8xf32>
    %75 = tpu.matmul %70, %72, %cst_25 {dimension_numbers = #tpu.dot_dimension_numbers<[1], [1], [0], [0], [0, 0, 1, 0], [], []>} : vector<8x8xbf16>, vector<8x8xbf16>, vector<8x8xf32> -> vector<8x8xf32>
    "tpu.trace_stop"() : () -> ()
    %76 = arith.addf %75, %9 : vector<8x8xf32>
    %cst_26 = arith.constant dense<0xFF800000> : vector<8xf32>
    %77 = vector.multi_reduction <maximumf>, %76, %cst_26 [1] : vector<8x8xf32> to vector<8xf32>
    %78 = vector.shape_cast %77 : vector<8xf32> to vector<8x1xf32>
    %79 = vector.broadcast %78 : vector<8x1xf32> to vector<8x8xf32>
    %80 = arith.subf %76, %79 : vector<8x8xf32>
    %81 = math.exp %80 : vector<8x8xf32>
    %cst_27 = arith.constant dense<0.000000e+00> : vector<8xf32>
    %82 = vector.multi_reduction <add>, %81, %cst_27 [1] : vector<8x8xf32> to vector<8xf32>
    %83 = vector.shape_cast %82 : vector<8xf32> to vector<8x1xf32>
    %84 = tpu.reciprocal %83 : vector<8x1xf32> -> vector<8x1xf32>
    %85 = vector.broadcast %84 : vector<8x1xf32> to vector<8x8xf32>
    %86 = arith.mulf %81, %85 : vector<8x8xf32>
    %87 = arith.truncf %86 : vector<8x8xf32> to vector<8x8xbf16>
    %cst_28 = arith.constant dense<0.000000e+00> : vector<8x8xf32>
    %88 = tpu.matmul %87, %74, %cst_28 {dimension_numbers = #tpu.dot_dimension_numbers<[1], [0], [0], [1], [0, 0, 1, 1], [], []>} : vector<8x8xbf16>, vector<8x8xbf16>, vector<8x8xf32> -> vector<8x8xf32>
    %89 = vector.extract_strided_slice %44 {offsets = [0, 16], sizes = [8, 8], strides = [1, 1]} : vector<8x128xf32> to vector<8x8xf32>
    %cst_29 = arith.constant 0.353553385 : f32
    %90 = vector.broadcast %cst_29 : f32 to vector<8x8xf32>
    %91 = arith.mulf %89, %90 : vector<8x8xf32>
    %92 = arith.truncf %91 : vector<8x8xf32> to vector<8x8xbf16>
    %93 = vector.extract_strided_slice %44 {offsets = [0, 48], sizes = [8, 8], strides = [1, 1]} : vector<8x128xf32> to vector<8x8xf32>
    %94 = arith.truncf %93 : vector<8x8xf32> to vector<8x8xbf16>
    %95 = vector.extract_strided_slice %44 {offsets = [0, 80], sizes = [8, 8], strides = [1, 1]} : vector<8x128xf32> to vector<8x8xf32>
    %96 = arith.truncf %95 : vector<8x8xf32> to vector<8x8xbf16>
    "tpu.trace_start"() <{level = 10 : i32, message = "qd,kd->qk"}> : () -> ()
    %cst_30 = arith.constant dense<0.000000e+00> : vector<8x8xf32>
    %97 = tpu.matmul %92, %94, %cst_30 {dimension_numbers = #tpu.dot_dimension_numbers<[1], [1], [0], [0], [0, 0, 1, 0], [], []>} : vector<8x8xbf16>, vector<8x8xbf16>, vector<8x8xf32> -> vector<8x8xf32>
    "tpu.trace_stop"() : () -> ()
    %98 = arith.addf %97, %9 : vector<8x8xf32>
    %cst_31 = arith.constant dense<0xFF800000> : vector<8xf32>
    %99 = vector.multi_reduction <maximumf>, %98, %cst_31 [1] : vector<8x8xf32> to vector<8xf32>
    %100 = vector.shape_cast %99 : vector<8xf32> to vector<8x1xf32>
    %101 = vector.broadcast %100 : vector<8x1xf32> to vector<8x8xf32>
    %102 = arith.subf %98, %101 : vector<8x8xf32>
    %103 = math.exp %102 : vector<8x8xf32>
    %cst_32 = arith.constant dense<0.000000e+00> : vector<8xf32>
    %104 = vector.multi_reduction <add>, %103, %cst_32 [1] : vector<8x8xf32> to vector<8xf32>
    %105 = vector.shape_cast %104 : vector<8xf32> to vector<8x1xf32>
    %106 = tpu.reciprocal %105 : vector<8x1xf32> -> vector<8x1xf32>
    %107 = vector.broadcast %106 : vector<8x1xf32> to vector<8x8xf32>
    %108 = arith.mulf %103, %107 : vector<8x8xf32>
    %109 = arith.truncf %108 : vector<8x8xf32> to vector<8x8xbf16>
    %cst_33 = arith.constant dense<0.000000e+00> : vector<8x8xf32>
    %110 = tpu.matmul %109, %96, %cst_33 {dimension_numbers = #tpu.dot_dimension_numbers<[1], [0], [0], [1], [0, 0, 1, 1], [], []>} : vector<8x8xbf16>, vector<8x8xbf16>, vector<8x8xf32> -> vector<8x8xf32>
    %111 = vector.extract_strided_slice %44 {offsets = [0, 24], sizes = [8, 8], strides = [1, 1]} : vector<8x128xf32> to vector<8x8xf32>
    %cst_34 = arith.constant 0.353553385 : f32
    %112 = vector.broadcast %cst_34 : f32 to vector<8x8xf32>
    %113 = arith.mulf %111, %112 : vector<8x8xf32>
    %114 = arith.truncf %113 : vector<8x8xf32> to vector<8x8xbf16>
    %115 = vector.extract_strided_slice %44 {offsets = [0, 56], sizes = [8, 8], strides = [1, 1]} : vector<8x128xf32> to vector<8x8xf32>
    %116 = arith.truncf %115 : vector<8x8xf32> to vector<8x8xbf16>
    %117 = vector.extract_strided_slice %44 {offsets = [0, 88], sizes = [8, 8], strides = [1, 1]} : vector<8x128xf32> to vector<8x8xf32>
    %118 = arith.truncf %117 : vector<8x8xf32> to vector<8x8xbf16>
    "tpu.trace_start"() <{level = 10 : i32, message = "qd,kd->qk"}> : () -> ()
    %cst_35 = arith.constant dense<0.000000e+00> : vector<8x8xf32>
    %119 = tpu.matmul %114, %116, %cst_35 {dimension_numbers = #tpu.dot_dimension_numbers<[1], [1], [0], [0], [0, 0, 1, 0], [], []>} : vector<8x8xbf16>, vector<8x8xbf16>, vector<8x8xf32> -> vector<8x8xf32>
    "tpu.trace_stop"() : () -> ()
    %120 = arith.addf %119, %9 : vector<8x8xf32>
    %cst_36 = arith.constant dense<0xFF800000> : vector<8xf32>
    %121 = vector.multi_reduction <maximumf>, %120, %cst_36 [1] : vector<8x8xf32> to vector<8xf32>
    %122 = vector.shape_cast %121 : vector<8xf32> to vector<8x1xf32>
    %123 = vector.broadcast %122 : vector<8x1xf32> to vector<8x8xf32>
    %124 = arith.subf %120, %123 : vector<8x8xf32>
    %125 = math.exp %124 : vector<8x8xf32>
    %cst_37 = arith.constant dense<0.000000e+00> : vector<8xf32>
    %126 = vector.multi_reduction <add>, %125, %cst_37 [1] : vector<8x8xf32> to vector<8xf32>
    %127 = vector.shape_cast %126 : vector<8xf32> to vector<8x1xf32>
    %128 = tpu.reciprocal %127 : vector<8x1xf32> -> vector<8x1xf32>
    %129 = vector.broadcast %128 : vector<8x1xf32> to vector<8x8xf32>
    %130 = arith.mulf %125, %129 : vector<8x8xf32>
    %131 = arith.truncf %130 : vector<8x8xf32> to vector<8x8xbf16>
    %cst_38 = arith.constant dense<0.000000e+00> : vector<8x8xf32>
    %132 = tpu.matmul %131, %118, %cst_38 {dimension_numbers = #tpu.dot_dimension_numbers<[1], [0], [0], [1], [0, 0, 1, 1], [], []>} : vector<8x8xbf16>, vector<8x8xbf16>, vector<8x8xf32> -> vector<8x8xf32>
    %133 = tpu.concatenate %66, %88, %110, %132 in 1 : vector<8x8xf32>, vector<8x8xf32>, vector<8x8xf32>, vector<8x8xf32> -> vector<8x32xf32>
    %134 = vector.extract_strided_slice %43 {offsets = [8, 0], sizes = [8, 128], strides = [1, 1]} : vector<16x128xf32> to vector<8x128xf32>
    %135 = vector.extract_strided_slice %134 {offsets = [0, 0], sizes = [8, 8], strides = [1, 1]} : vector<8x128xf32> to vector<8x8xf32>
    %cst_39 = arith.constant 0.353553385 : f32
    %136 = vector.broadcast %cst_39 : f32 to vector<8x8xf32>
    %137 = arith.mulf %135, %136 : vector<8x8xf32>
    %138 = arith.truncf %137 : vector<8x8xf32> to vector<8x8xbf16>
    %139 = vector.extract_strided_slice %134 {offsets = [0, 32], sizes = [8, 8], strides = [1, 1]} : vector<8x128xf32> to vector<8x8xf32>
    %140 = arith.truncf %139 : vector<8x8xf32> to vector<8x8xbf16>
    %141 = vector.extract_strided_slice %134 {offsets = [0, 64], sizes = [8, 8], strides = [1, 1]} : vector<8x128xf32> to vector<8x8xf32>
    %142 = arith.truncf %141 : vector<8x8xf32> to vector<8x8xbf16>
    "tpu.trace_start"() <{level = 10 : i32, message = "qd,kd->qk"}> : () -> ()
    %cst_40 = arith.constant dense<0.000000e+00> : vector<8x8xf32>
    %143 = tpu.matmul %138, %140, %cst_40 {dimension_numbers = #tpu.dot_dimension_numbers<[1], [1], [0], [0], [0, 0, 1, 0], [], []>} : vector<8x8xbf16>, vector<8x8xbf16>, vector<8x8xf32> -> vector<8x8xf32>
    "tpu.trace_stop"() : () -> ()
    %144 = arith.addf %143, %9 : vector<8x8xf32>
    %cst_41 = arith.constant dense<0xFF800000> : vector<8xf32>
    %145 = vector.multi_reduction <maximumf>, %144, %cst_41 [1] : vector<8x8xf32> to vector<8xf32>
    %146 = vector.shape_cast %145 : vector<8xf32> to vector<8x1xf32>
    %147 = vector.broadcast %146 : vector<8x1xf32> to vector<8x8xf32>
    %148 = arith.subf %144, %147 : vector<8x8xf32>
    %149 = math.exp %148 : vector<8x8xf32>
    %cst_42 = arith.constant dense<0.000000e+00> : vector<8xf32>
    %150 = vector.multi_reduction <add>, %149, %cst_42 [1] : vector<8x8xf32> to vector<8xf32>
    %151 = vector.shape_cast %150 : vector<8xf32> to vector<8x1xf32>
    %152 = tpu.reciprocal %151 : vector<8x1xf32> -> vector<8x1xf32>
    %153 = vector.broadcast %152 : vector<8x1xf32> to vector<8x8xf32>
    %154 = arith.mulf %149, %153 : vector<8x8xf32>
    %155 = arith.truncf %154 : vector<8x8xf32> to vector<8x8xbf16>
    %cst_43 = arith.constant dense<0.000000e+00> : vector<8x8xf32>
    %156 = tpu.matmul %155, %142, %cst_43 {dimension_numbers = #tpu.dot_dimension_numbers<[1], [0], [0], [1], [0, 0, 1, 1], [], []>} : vector<8x8xbf16>, vector<8x8xbf16>, vector<8x8xf32> -> vector<8x8xf32>
    %157 = vector.extract_strided_slice %134 {offsets = [0, 8], sizes = [8, 8], strides = [1, 1]} : vector<8x128xf32> to vector<8x8xf32>
    %cst_44 = arith.constant 0.353553385 : f32
    %158 = vector.broadcast %cst_44 : f32 to vector<8x8xf32>
    %159 = arith.mulf %157, %158 : vector<8x8xf32>
    %160 = arith.truncf %159 : vector<8x8xf32> to vector<8x8xbf16>
    %161 = vector.extract_strided_slice %134 {offsets = [0, 40], sizes = [8, 8], strides = [1, 1]} : vector<8x128xf32> to vector<8x8xf32>
    %162 = arith.truncf %161 : vector<8x8xf32> to vector<8x8xbf16>
    %163 = vector.extract_strided_slice %134 {offsets = [0, 72], sizes = [8, 8], strides = [1, 1]} : vector<8x128xf32> to vector<8x8xf32>
    %164 = arith.truncf %163 : vector<8x8xf32> to vector<8x8xbf16>
    "tpu.trace_start"() <{level = 10 : i32, message = "qd,kd->qk"}> : () -> ()
    %cst_45 = arith.constant dense<0.000000e+00> : vector<8x8xf32>
    %165 = tpu.matmul %160, %162, %cst_45 {dimension_numbers = #tpu.dot_dimension_numbers<[1], [1], [0], [0], [0, 0, 1, 0], [], []>} : vector<8x8xbf16>, vector<8x8xbf16>, vector<8x8xf32> -> vector<8x8xf32>
    "tpu.trace_stop"() : () -> ()
    %166 = arith.addf %165, %9 : vector<8x8xf32>
    %cst_46 = arith.constant dense<0xFF800000> : vector<8xf32>
    %167 = vector.multi_reduction <maximumf>, %166, %cst_46 [1] : vector<8x8xf32> to vector<8xf32>
    %168 = vector.shape_cast %167 : vector<8xf32> to vector<8x1xf32>
    %169 = vector.broadcast %168 : vector<8x1xf32> to vector<8x8xf32>
    %170 = arith.subf %166, %169 : vector<8x8xf32>
    %171 = math.exp %170 : vector<8x8xf32>
    %cst_47 = arith.constant dense<0.000000e+00> : vector<8xf32>
    %172 = vector.multi_reduction <add>, %171, %cst_47 [1] : vector<8x8xf32> to vector<8xf32>
    %173 = vector.shape_cast %172 : vector<8xf32> to vector<8x1xf32>
    %174 = tpu.reciprocal %173 : vector<8x1xf32> -> vector<8x1xf32>
    %175 = vector.broadcast %174 : vector<8x1xf32> to vector<8x8xf32>
    %176 = arith.mulf %171, %175 : vector<8x8xf32>
    %177 = arith.truncf %176 : vector<8x8xf32> to vector<8x8xbf16>
    %cst_48 = arith.constant dense<0.000000e+00> : vector<8x8xf32>
    %178 = tpu.matmul %177, %164, %cst_48 {dimension_numbers = #tpu.dot_dimension_numbers<[1], [0], [0], [1], [0, 0, 1, 1], [], []>} : vector<8x8xbf16>, vector<8x8xbf16>, vector<8x8xf32> -> vector<8x8xf32>
    %179 = vector.extract_strided_slice %134 {offsets = [0, 16], sizes = [8, 8], strides = [1, 1]} : vector<8x128xf32> to vector<8x8xf32>
    %cst_49 = arith.constant 0.353553385 : f32
    %180 = vector.broadcast %cst_49 : f32 to vector<8x8xf32>
    %181 = arith.mulf %179, %180 : vector<8x8xf32>
    %182 = arith.truncf %181 : vector<8x8xf32> to vector<8x8xbf16>
    %183 = vector.extract_strided_slice %134 {offsets = [0, 48], sizes = [8, 8], strides = [1, 1]} : vector<8x128xf32> to vector<8x8xf32>
    %184 = arith.truncf %183 : vector<8x8xf32> to vector<8x8xbf16>
    %185 = vector.extract_strided_slice %134 {offsets = [0, 80], sizes = [8, 8], strides = [1, 1]} : vector<8x128xf32> to vector<8x8xf32>
    %186 = arith.truncf %185 : vector<8x8xf32> to vector<8x8xbf16>
    "tpu.trace_start"() <{level = 10 : i32, message = "qd,kd->qk"}> : () -> ()
    %cst_50 = arith.constant dense<0.000000e+00> : vector<8x8xf32>
    %187 = tpu.matmul %182, %184, %cst_50 {dimension_numbers = #tpu.dot_dimension_numbers<[1], [1], [0], [0], [0, 0, 1, 0], [], []>} : vector<8x8xbf16>, vector<8x8xbf16>, vector<8x8xf32> -> vector<8x8xf32>
    "tpu.trace_stop"() : () -> ()
    %188 = arith.addf %187, %9 : vector<8x8xf32>
    %cst_51 = arith.constant dense<0xFF800000> : vector<8xf32>
    %189 = vector.multi_reduction <maximumf>, %188, %cst_51 [1] : vector<8x8xf32> to vector<8xf32>
    %190 = vector.shape_cast %189 : vector<8xf32> to vector<8x1xf32>
    %191 = vector.broadcast %190 : vector<8x1xf32> to vector<8x8xf32>
    %192 = arith.subf %188, %191 : vector<8x8xf32>
    %193 = math.exp %192 : vector<8x8xf32>
    %cst_52 = arith.constant dense<0.000000e+00> : vector<8xf32>
    %194 = vector.multi_reduction <add>, %193, %cst_52 [1] : vector<8x8xf32> to vector<8xf32>
    %195 = vector.shape_cast %194 : vector<8xf32> to vector<8x1xf32>
    %196 = tpu.reciprocal %195 : vector<8x1xf32> -> vector<8x1xf32>
    %197 = vector.broadcast %196 : vector<8x1xf32> to vector<8x8xf32>
    %198 = arith.mulf %193, %197 : vector<8x8xf32>
    %199 = arith.truncf %198 : vector<8x8xf32> to vector<8x8xbf16>
    %cst_53 = arith.constant dense<0.000000e+00> : vector<8x8xf32>
    %200 = tpu.matmul %199, %186, %cst_53 {dimension_numbers = #tpu.dot_dimension_numbers<[1], [0], [0], [1], [0, 0, 1, 1], [], []>} : vector<8x8xbf16>, vector<8x8xbf16>, vector<8x8xf32> -> vector<8x8xf32>
    %201 = vector.extract_strided_slice %134 {offsets = [0, 24], sizes = [8, 8], strides = [1, 1]} : vector<8x128xf32> to vector<8x8xf32>
    %cst_54 = arith.constant 0.353553385 : f32
    %202 = vector.broadcast %cst_54 : f32 to vector<8x8xf32>
    %203 = arith.mulf %201, %202 : vector<8x8xf32>
    %204 = arith.truncf %203 : vector<8x8xf32> to vector<8x8xbf16>
    %205 = vector.extract_strided_slice %134 {offsets = [0, 56], sizes = [8, 8], strides = [1, 1]} : vector<8x128xf32> to vector<8x8xf32>
    %206 = arith.truncf %205 : vector<8x8xf32> to vector<8x8xbf16>
    %207 = vector.extract_strided_slice %134 {offsets = [0, 88], sizes = [8, 8], strides = [1, 1]} : vector<8x128xf32> to vector<8x8xf32>
    %208 = arith.truncf %207 : vector<8x8xf32> to vector<8x8xbf16>
    "tpu.trace_start"() <{level = 10 : i32, message = "qd,kd->qk"}> : () -> ()
    %cst_55 = arith.constant dense<0.000000e+00> : vector<8x8xf32>
    %209 = tpu.matmul %204, %206, %cst_55 {dimension_numbers = #tpu.dot_dimension_numbers<[1], [1], [0], [0], [0, 0, 1, 0], [], []>} : vector<8x8xbf16>, vector<8x8xbf16>, vector<8x8xf32> -> vector<8x8xf32>
    "tpu.trace_stop"() : () -> ()
    %210 = arith.addf %209, %9 : vector<8x8xf32>
    %cst_56 = arith.constant dense<0xFF800000> : vector<8xf32>
    %211 = vector.multi_reduction <maximumf>, %210, %cst_56 [1] : vector<8x8xf32> to vector<8xf32>
    %212 = vector.shape_cast %211 : vector<8xf32> to vector<8x1xf32>
    %213 = vector.broadcast %212 : vector<8x1xf32> to vector<8x8xf32>
    %214 = arith.subf %210, %213 : vector<8x8xf32>
    %215 = math.exp %214 : vector<8x8xf32>
    %cst_57 = arith.constant dense<0.000000e+00> : vector<8xf32>
    %216 = vector.multi_reduction <add>, %215, %cst_57 [1] : vector<8x8xf32> to vector<8xf32>
    %217 = vector.shape_cast %216 : vector<8xf32> to vector<8x1xf32>
    %218 = tpu.reciprocal %217 : vector<8x1xf32> -> vector<8x1xf32>
    %219 = vector.broadcast %218 : vector<8x1xf32> to vector<8x8xf32>
    %220 = arith.mulf %215, %219 : vector<8x8xf32>
    %221 = arith.truncf %220 : vector<8x8xf32> to vector<8x8xbf16>
    %cst_58 = arith.constant dense<0.000000e+00> : vector<8x8xf32>
    %222 = tpu.matmul %221, %208, %cst_58 {dimension_numbers = #tpu.dot_dimension_numbers<[1], [0], [0], [1], [0, 0, 1, 1], [], []>} : vector<8x8xbf16>, vector<8x8xbf16>, vector<8x8xf32> -> vector<8x8xf32>
    %223 = tpu.concatenate %156, %178, %200, %222 in 1 : vector<8x8xf32>, vector<8x8xf32>, vector<8x8xf32>, vector<8x8xf32> -> vector<8x32xf32>
    %224 = tpu.concatenate %133, %223 in 0 : vector<8x32xf32>, vector<8x32xf32> -> vector<16x32xf32>
    %225 = arith.truncf %224 : vector<16x32xf32> to vector<16x32xbf16>
    %c0_59 = arith.constant 0 : index
    %c0_60 = arith.constant 0 : index
    %c96 = arith.constant 96 : index
    %226 = vector.load %arg2[%c0_59, %c0_60, %c96] : memref<1x192x128xbf16, #tpu.memory_space<vmem>>, vector<1x32x32xbf16>
    %227 = vector.shape_cast %226 : vector<1x32x32xbf16> to vector<32x32xbf16>
    %cst_61 = arith.constant dense<0.000000e+00> : vector<16x32xf32>
    %228 = tpu.matmul %225, %227, %cst_61 {dimension_numbers = #tpu.dot_dimension_numbers<[1], [0], [0], [1], [0, 0, 1, 1], [], []>} : vector<16x32xbf16>, vector<32x32xbf16>, vector<16x32xf32> -> vector<16x32xf32>
    %229 = arith.addf %3, %228 : vector<16x32xf32>
    %c0_62 = arith.constant 0 : index
    %c4_63 = arith.constant 4 : index
    %c96_64 = arith.constant 96 : index
    %230 = vector.load %arg3[%c0_62, %c4_63, %c96_64] : memref<1x16x128xf32, #tpu.memory_space<vmem>>, vector<1x1x32xf32>
    %231 = vector.shape_cast %230 : vector<1x1x32xf32> to vector<1x32xf32>
    %232 = vector.broadcast %231 : vector<1x32xf32> to vector<16x32xf32>
    %233 = arith.addf %229, %232 : vector<16x32xf32>
    %c0_65 = arith.constant 0 : index
    %c2 = arith.constant 2 : index
    %c0_66 = arith.constant 0 : index
    %234 = vector.load %arg3[%c0_65, %c2, %c0_66] : memref<1x16x128xf32, #tpu.memory_space<vmem>>, vector<1x1x32xf32>
    %235 = vector.shape_cast %234 : vector<1x1x32xf32> to vector<1x32xf32>
    %c0_67 = arith.constant 0 : index
    %c3 = arith.constant 3 : index
    %c0_68 = arith.constant 0 : index
    %236 = vector.load %arg3[%c0_67, %c3, %c0_68] : memref<1x16x128xf32, #tpu.memory_space<vmem>>, vector<1x1x32xf32>
    %237 = vector.shape_cast %236 : vector<1x1x32xf32> to vector<1x32xf32>
    %cst_69 = arith.constant dense<0.000000e+00> : vector<16xf32>
    %238 = vector.multi_reduction <add>, %233, %cst_69 [1] : vector<16x32xf32> to vector<16xf32>
    %239 = vector.shape_cast %238 : vector<16xf32> to vector<16x1xf32>
    %cst_70 = arith.constant 3.200000e+01 : f32
    %240 = vector.broadcast %cst_70 : f32 to vector<16x1xf32>
    %241 = arith.divf %239, %240 : vector<16x1xf32>
    %242 = vector.broadcast %241 : vector<16x1xf32> to vector<16x32xf32>
    %243 = arith.subf %233, %242 : vector<16x32xf32>
    %244 = arith.mulf %243, %243 : vector<16x32xf32>
    %cst_71 = arith.constant dense<0.000000e+00> : vector<16xf32>
    %245 = vector.multi_reduction <add>, %244, %cst_71 [1] : vector<16x32xf32> to vector<16xf32>
    %246 = vector.shape_cast %245 : vector<16xf32> to vector<16x1xf32>
    %cst_72 = arith.constant 3.200000e+01 : f32
    %247 = vector.broadcast %cst_72 : f32 to vector<16x1xf32>
    %248 = arith.divf %246, %247 : vector<16x1xf32>
    %249 = vector.broadcast %241 : vector<16x1xf32> to vector<16x32xf32>
    %250 = arith.subf %233, %249 : vector<16x32xf32>
    %cst_73 = arith.constant 9.99999974E-6 : f32
    %251 = vector.broadcast %cst_73 : f32 to vector<16x1xf32>
    %252 = arith.addf %248, %251 : vector<16x1xf32>
    %253 = math.rsqrt %252 : vector<16x1xf32>
    %254 = vector.broadcast %253 : vector<16x1xf32> to vector<16x32xf32>
    %255 = arith.mulf %250, %254 : vector<16x32xf32>
    %256 = vector.broadcast %235 : vector<1x32xf32> to vector<16x32xf32>
    %257 = arith.mulf %255, %256 : vector<16x32xf32>
    %258 = vector.broadcast %237 : vector<1x32xf32> to vector<16x32xf32>
    %259 = arith.addf %257, %258 : vector<16x32xf32>
    %260 = arith.truncf %259 : vector<16x32xf32> to vector<16x32xbf16>
    %c0_74 = arith.constant 0 : index
    %c32 = arith.constant 32 : index
    %c0_75 = arith.constant 0 : index
    %261 = vector.load %arg2[%c0_74, %c32, %c0_75] : memref<1x192x128xbf16, #tpu.memory_space<vmem>>, vector<1x32x128xbf16>
    %262 = vector.shape_cast %261 : vector<1x32x128xbf16> to vector<32x128xbf16>
    %cst_76 = arith.constant dense<0.000000e+00> : vector<16x128xf32>
    %263 = tpu.matmul %260, %262, %cst_76 {dimension_numbers = #tpu.dot_dimension_numbers<[1], [0], [0], [1], [0, 0, 1, 1], [], []>} : vector<16x32xbf16>, vector<32x128xbf16>, vector<16x128xf32> -> vector<16x128xf32>
    %c0_77 = arith.constant 0 : index
    %c5 = arith.constant 5 : index
    %c0_78 = arith.constant 0 : index
    %264 = vector.load %arg3[%c0_77, %c5, %c0_78] : memref<1x16x128xf32, #tpu.memory_space<vmem>>, vector<1x1x128xf32>
    %265 = vector.shape_cast %264 : vector<1x1x128xf32> to vector<1x128xf32>
    %266 = vector.broadcast %265 : vector<1x128xf32> to vector<16x128xf32>
    %267 = arith.addf %263, %266 : vector<16x128xf32>
    %cst_79 = arith.constant -1.702000e+00 : f32
    %268 = vector.broadcast %cst_79 : f32 to vector<16x128xf32>
    %269 = arith.mulf %268, %267 : vector<16x128xf32>
    %270 = math.exp %269 : vector<16x128xf32>
    %cst_80 = arith.constant 1.000000e+00 : f32
    %271 = vector.broadcast %cst_80 : f32 to vector<16x128xf32>
    %272 = arith.addf %271, %270 : vector<16x128xf32>
    %273 = tpu.reciprocal %272 : vector<16x128xf32> -> vector<16x128xf32>
    %274 = arith.mulf %267, %273 : vector<16x128xf32>
    %275 = arith.truncf %274 : vector<16x128xf32> to vector<16x128xbf16>
    %c0_81 = arith.constant 0 : index
    %c64 = arith.constant 64 : index
    %c0_82 = arith.constant 0 : index
    %276 = vector.load %arg2[%c0_81, %c64, %c0_82] : memref<1x192x128xbf16, #tpu.memory_space<vmem>>, vector<1x128x32xbf16>
    %277 = vector.shape_cast %276 : vector<1x128x32xbf16> to vector<128x32xbf16>
    %cst_83 = arith.constant dense<0.000000e+00> : vector<16x32xf32>
    %278 = tpu.matmul %275, %277, %cst_83 {dimension_numbers = #tpu.dot_dimension_numbers<[1], [0], [0], [1], [0, 0, 1, 1], [], []>} : vector<16x128xbf16>, vector<128x32xbf16>, vector<16x32xf32> -> vector<16x32xf32>
    %279 = arith.addf %233, %278 : vector<16x32xf32>
    %c0_84 = arith.constant 0 : index
    %c6 = arith.constant 6 : index
    %c0_85 = arith.constant 0 : index
    %280 = vector.load %arg3[%c0_84, %c6, %c0_85] : memref<1x16x128xf32, #tpu.memory_space<vmem>>, vector<1x1x32xf32>
    %281 = vector.shape_cast %280 : vector<1x1x32xf32> to vector<1x32xf32>
    %282 = vector.broadcast %281 : vector<1x32xf32> to vector<16x32xf32>
    %283 = arith.addf %279, %282 : vector<16x32xf32>
    %c1_i32 = arith.constant 1 : i32
    %284 = arith.cmpi slt, %arg0, %c1_i32 : i32
    %285 = arith.extui %284 : i1 to i32
    %c0_i32_86 = arith.constant 0 : i32
    %286 = arith.cmpi ne, %285, %c0_i32_86 : i32
    scf.if %286 {
      %c0_89 = arith.constant 0 : index
      %c0_90 = arith.constant 0 : index
      %290 = vector.load %arg4[%c0_89, %c0_90] : memref<16x32xf32, #tpu.memory_space<vmem>>, vector<16x32xf32>
      tpu.vector_store %arg4[%c0_89, %c0_90], %283 {strides = array<i32>} : memref<16x32xf32, #tpu.memory_space<vmem>>, vector<16x32xf32>,
    } else {
    }
    %c1_i32_87 = arith.constant 1 : i32
    %287 = arith.cmpi eq, %arg0, %c1_i32_87 : i32
    %288 = arith.extui %287 : i1 to i32
    %c0_i32_88 = arith.constant 0 : i32
    %289 = arith.cmpi ne, %288, %c0_i32_88 : i32
    scf.if %289 {
      %c0_89 = arith.constant 0 : index
      %c7 = arith.constant 7 : index
      %c0_90 = arith.constant 0 : index
      %290 = vector.load %arg3[%c0_89, %c7, %c0_90] : memref<1x16x128xf32, #tpu.memory_space<vmem>>, vector<1x1x32xf32>
      %291 = vector.shape_cast %290 : vector<1x1x32xf32> to vector<1x32xf32>
      %c0_91 = arith.constant 0 : index
      %c8 = arith.constant 8 : index
      %c0_92 = arith.constant 0 : index
      %292 = vector.load %arg3[%c0_91, %c8, %c0_92] : memref<1x16x128xf32, #tpu.memory_space<vmem>>, vector<1x1x32xf32>
      %293 = vector.shape_cast %292 : vector<1x1x32xf32> to vector<1x32xf32>
      %cst_93 = arith.constant dense<0.000000e+00> : vector<16xf32>
      %294 = vector.multi_reduction <add>, %283, %cst_93 [1] : vector<16x32xf32> to vector<16xf32>
      %295 = vector.shape_cast %294 : vector<16xf32> to vector<16x1xf32>
      %cst_94 = arith.constant 3.200000e+01 : f32
      %296 = vector.broadcast %cst_94 : f32 to vector<16x1xf32>
      %297 = arith.divf %295, %296 : vector<16x1xf32>
      %298 = vector.broadcast %297 : vector<16x1xf32> to vector<16x32xf32>
      %299 = arith.subf %283, %298 : vector<16x32xf32>
      %300 = arith.mulf %299, %299 : vector<16x32xf32>
      %cst_95 = arith.constant dense<0.000000e+00> : vector<16xf32>
      %301 = vector.multi_reduction <add>, %300, %cst_95 [1] : vector<16x32xf32> to vector<16xf32>
      %302 = vector.shape_cast %301 : vector<16xf32> to vector<16x1xf32>
      %cst_96 = arith.constant 3.200000e+01 : f32
      %303 = vector.broadcast %cst_96 : f32 to vector<16x1xf32>
      %304 = arith.divf %302, %303 : vector<16x1xf32>
      %305 = vector.broadcast %297 : vector<16x1xf32> to vector<16x32xf32>
      %306 = arith.subf %283, %305 : vector<16x32xf32>
      %cst_97 = arith.constant 9.99999974E-6 : f32
      %307 = vector.broadcast %cst_97 : f32 to vector<16x1xf32>
      %308 = arith.addf %304, %307 : vector<16x1xf32>
      %309 = math.rsqrt %308 : vector<16x1xf32>
      %310 = vector.broadcast %309 : vector<16x1xf32> to vector<16x32xf32>
      %311 = arith.mulf %306, %310 : vector<16x32xf32>
      %312 = vector.broadcast %291 : vector<1x32xf32> to vector<16x32xf32>
      %313 = arith.mulf %311, %312 : vector<16x32xf32>
      %314 = vector.broadcast %293 : vector<1x32xf32> to vector<16x32xf32>
      %315 = arith.addf %313, %314 : vector<16x32xf32>
      %c0_98 = arith.constant 0 : index
      %c0_99 = arith.constant 0 : index
      %316 = vector.load %arg4[%c0_98, %c0_99] : memref<16x32xf32, #tpu.memory_space<vmem>>, vector<16x32xf32>
      tpu.vector_store %arg4[%c0_98, %c0_99], %315 {strides = array<i32>} : memref<16x32xf32, #tpu.memory_space<vmem>>, vector<16x32xf32>,
    } else {
    }
    return
  }
  func.func @transform_0(%arg0: i32) -> (i32, i32) {
    %c0_i32 = arith.constant 0 : i32
    %c0_i32_0 = arith.constant 0 : i32
    %c0_i32_1 = arith.constant 0 : i32
    return %c0_i32, %c0_i32_0 : i32, i32
  }
  func.func @transform_1(%arg0: i32) -> (i32, i32, i32) {
    %c0_i32 = arith.constant 0 : i32
    %c0_i32_0 = arith.constant 0 : i32
    %c0_i32_1 = arith.constant 0 : i32
    return %arg0, %c0_i32, %c0_i32_0 : i32, i32, i32
  }
  func.func @transform_2(%arg0: i32) -> (i32, i32, i32) {
    %c0_i32 = arith.constant 0 : i32
    %c0_i32_0 = arith.constant 0 : i32
    %c0_i32_1 = arith.constant 0 : i32
    return %arg0, %c0_i32, %c0_i32_0 : i32, i32, i32
  }
  func.func @transform_3(%arg0: i32) -> (i32, i32) {
    %c0_i32 = arith.constant 0 : i32
    %c0_i32_0 = arith.constant 0 : i32
    %c0_i32_1 = arith.constant 0 : i32
    return %c0_i32, %c0_i32_0 : i32, i32
  }
}

</mosaic_0001>

<bundles_post_ra>
// kernel: tpu_custom_call.1
= control target key start
LH: loop header
LB: loop body
LE: loop exit
PB: predicated region body
PF: predicated region fallthrough
CT: control target
= control target key end

     0   :  { %8 = vsyncpa [#allocation3], 0  ;;  %s2839_s0 = inlined_call_operand.hbm [shape: f32[16,32], index: 0, kind: input, shape index: {}]   ;;  %s2840_s1 = inlined_call_operand.hbm [shape: bf16[2,192,128], index: 1, kind: input, shape index: {}]   ;;  %s2841_s2 = inlined_call_operand.hbm [shape: f32[2,16,128], index: 2, kind: input, shape index: {}]   ;;  %s2842_s3 = inlined_call_operand.hbm [shape: f32[16,32], index: 3, kind: output, shape index: {}]  }
   0x1   :  { %9 = vsyncpa [#allocation6], 0 }
   0x2   :  { %11 = vsyncpa [#allocation6 + $0x1], 0 }
   0x3   :  { %12 = vsyncpa [#allocation4], 0  ;;  %s2355_s12 = smov 0   ;;  %s2357_s13 = smov 0  }
   0x4   :  { %s2359_s14 = smov 0   ;;  %s2361_s15 = smov 0  }
   0x5 LB: > { %s2376_s16 = sadd.s32 1, %s2306_s15   ;;  %s46_s17 = sadd.s32 1, %s2302_s14  ;;  %s2306_s15 = sphi %s2361_s15, %s2864_s15   ;;  %s2302_s14 = sphi %s2359_s14, %s2863_s14   ;;  %s2298_s13 = sphi %s2357_s13, %s2862_s13   ;;  %s2294_s12 = sphi %s2355_s12, %s2861_s12  }
   0x6   : > { %s43_s18 = ssub.s32 %s2306_s15, %s2376_s16  ;;  %p53_p0 = scmp.ne.s32.totalorder %s2302_s14, %s2298_s13 }
   0x7   : > { %p44_p1 = scmp.eq.s32.totalorder %s43_s18, 0  ;;  %p54_p2 = scmp.eq.s32.totalorder %s2306_s15, 0 }
   0x8   : > { %p2008_p3 = scmp.lt.s32.totalorder %s2306_s15, 2  ;;  %s143_s20 = sand.u32 1, %s2306_s15  }
   0x9   : > { %s2386_s19 = scalar_select %p44_p1, %s2302_s14, %s46_s17  }
   0xa   : > { %p55_p4 = por %p54_p2, %p53_p0  ;;  %s145_s21 = sand.u32 1, %s2302_s14  }
   0xb   : > { %s1981_s22 = smul.u32 96, %s145_s21  ;;  %s2404_s30 = scalar_lea.sflag [#allocation6], %s143_s20 }
   0xc   : > { %p2392_p5 = pnand %p2008_p3, %p55_p4  ;;  %s1982_s24 = smul.u32 1536, %s2306_s15 }
   0xd   : > { %s147_s28 = scalar_lea.vmem [#allocation5], %s1981_s22  ;;  %s2155_s7 = scalar_lea.hbm %s2840_s1, 3072 }
   0xe   : > { %s2849_s23 = scalar_select %p2392_p5, 1, 0 }
   0xf   : > { %s2400_s27 = scalar_lea.hbm %s2840_s1, %s1982_s24  ;;  %s154_s29 = sshll.u32 %s147_s28, 4  ;;  %s2402_s29 = int_to_ptr.vmem [resolvable:$true] %s154_s29 }
  0x10   : > { %s2150_s4 = scalar_lea.hbm %s2400_s27, 1536  ;;  %p2844_p7 = pneg %p2392_p5 }
  0x11   : > { %p2151_p6 = scmp.ne.s32.totalorder %s2400_s27, %s2150_s4  ;;  %p2156_p10 = scmp.lt.u32.totalorder %s2400_s27, %s2840_s1 }
  0x12   : > { %p2157_p11 = scmp.lt.u32.totalorder %s2155_s7, %s2150_s4  ;;  %p2159_p13 = scmp.lt.u32.totalorder %s2150_s4, %s2400_s27 }
  0x13   : > { %p2153_p8 = pnand %p2844_p7, %p2151_p6 }
  0x14   : > { %p2158_p12 = por %p2157_p11, %p2156_p10 }
  0x15   : > { %p2154_p9 = pneg %p2153_p8 }
  0x16   : > { %p2160_p0 = por %p2159_p13, %p2158_p12 }
  0x18   : > { %p2161_p1 = pnand %p2160_p0, %p2154_p9 }
  0x1a   : > { %2164 = shalt.err (!%p2161_p1)
}
  0x1b   : > { %s2165_s10 = scalar_lea.vmem %s2402_s29, 1536  ;;  %s2308_s11 = smov [#allocation5]  }
  0x1c   : > { %p2166_p2 = scmp.ne.s32.totalorder %s2402_s29, %s2165_s10  ;;  %s2170_s17 = sshll.u32 %s2308_s11, 4  ;;  %s2171_s17 = int_to_ptr.vmem [resolvable:$false] %s2170_s17 }
  0x1d   : > { %s2172_s18 = scalar_lea.vmem %s2171_s17, 3072  ;;  %p2173_p6 = scmp.lt.s32.totalorder %s2402_s29, %s2171_s17 }
  0x1e   : > { %p2168_p3 = pnand %p2166_p2, %p2844_p7  ;;  %p2174_p8 = scmp.lt.s32.totalorder %s2172_s18, %s2165_s10 }
  0x20   : > { %p2169_p4 = pneg %p2168_p3  ;;  %p2175_p10 = por %p2174_p8, %p2173_p6 }
  0x22   : > { %p2176_p11 = pnand %p2175_p10, %p2169_p4 }
  0x24   : > { %2179 = shalt.err (!%p2176_p11)
}
  0x25   : > { %s2309_s20 = smov 64   ;;  %s2310_s22 = smov 4  }
  0x26   : > { %2003 = dma.hbm_to_vmem [thread:$0]  (!%p2392_p5), %s2400_s27, 1536, %s2402_s29, %s2404_s30, %s2309_s20, %s2309_s20, %s2310_s22  }
  0x27   : > { %s1734_s24 = sshll.u32 %s145_s21, 4  ;;  %s2435_s25 = sadd.s32 4294967295, %s2306_s15  }
  0x28   : > { %p59_p9 = scmp.ne.s32.totalorder %s2298_s13, %s2294_s12  ;;  %p2843_p12 = scmp.eq.s32.totalorder %s2435_s25, 0 }
  0x29   : > { %p1730_p13 = scmp.ge.s32.totalorder %s2306_s15, 1  ;;  %p117_p0 = scmp.lt.s32.totalorder %s2306_s15, 3 }
  0x2a   : > { %p2445_p2 = por %p2843_p12, %p59_p9  ;;  %s2311_s21 = smov [#allocation2]  }
  0x2b   : > { %p2449_p3 = pnand %p1730_p13, %p117_p0  ;;  %s129_s28 = sshll.u32 %s2311_s21, 4  ;;  %s2453_s28 = int_to_ptr.vmem [resolvable:$true] %s129_s28 }
  0x2c   : > { %s2850_s26 = scalar_select %p2445_p2, 1, 0 }
  0x2d   : > { %s2851_s27 = scalar_select %p2449_p3, 1, 0 }
  0x2e   : > { %p1996_p4 = pneg %p2449_p3  ;;  %s1790_s12 = sshll.u32 %s2306_s15, 8 }
  0x2f   : > { %s168_s29 = scalar_lea.vmem [#allocation7], %s1734_s24  ;;  %s2467_s8 = scalar_lea.hbm %s2841_s2, %s1790_s12 }
  0x30   : > { %s175_s4 = sshll.u32 %s168_s29, 4  ;;  %p2460_p6 = pnand %p1996_p4, %p2843_p12  ;;  %s2469_s4 = int_to_ptr.vmem [resolvable:$true] %s175_s4 }
  0x31   : > { %s2180_s11 = scalar_lea.hbm %s2839_s0, 256 }
  0x32   : > { %p2181_p8 = scmp.ne.s32.totalorder %s2839_s0, %s2180_s11  ;;  %p2182_p10 = pneg %p2460_p6 }
  0x33   : > { %p2187_p13 = scmp.lt.u32.totalorder %s2180_s11, %s2839_s0 }
  0x34   : > { %p2183_p11 = pnand %p2182_p10, %p2181_p8 }
  0x36   : > { %p2184_p9 = pneg %p2183_p11 }
  0x38   : > { %p2189_p0 = pnand %p2187_p13, %p2184_p9 }
  0x3a   : > { %2192 = shalt.err (!%p2189_p0)
}
  0x3b   : > { %s2193_s22 = scalar_lea.vmem %s2453_s28, 256  ;;  %p2201_p7 = scmp.lt.s32.totalorder %s2453_s28, %s2453_s28 }
  0x3c   : > { %p2194_p4 = scmp.ne.s32.totalorder %s2453_s28, %s2193_s22  ;;  %p2202_p2 = scmp.lt.s32.totalorder %s2193_s22, %s2193_s22 }
  0x3e   : > { %p2196_p1 = pnand %p2194_p4, %p2182_p10  ;;  %p2203_p3 = por %p2202_p2, %p2201_p7 }
  0x40   : > { %p2197_p12 = pneg %p2196_p1 }
  0x42   : > { %p2204_p5 = pnand %p2203_p3, %p2197_p12 }
  0x44   : > { %2207 = shalt.err (!%p2204_p5)
}
  0x45   : > { %s2312_s24 = smov 128   ;;  %s2313_s21 = smov 8  }
  0x46   : > { %1999 = dma.hbm_to_vmem [thread:$0]  (!%p2460_p6), %s2839_s0, 256, %s2453_s28, [#allocation3], %s2312_s24, %s2312_s24, %s2313_s21  }
  0x47   : > { %s2208_s6 = scalar_lea.hbm %s2467_s8, 256  ;;  %p2853_p5 = scmp.ne.s32.totalorder %s2849_s23, 0 }
  0x48   : > { %p2209_p7 = scmp.ne.s32.totalorder %s2467_s8, %s2208_s6  ;;  %s2213_s10 = scalar_lea.hbm %s2841_s2, 512 }
  0x49   : > { %p2854_p12 = pneg %p2853_p5  ;;  %p2214_p3 = scmp.lt.u32.totalorder %s2467_s8, %s2841_s2 }
  0x4a   : > { %p2215_p8 = scmp.lt.u32.totalorder %s2213_s10, %s2208_s6  ;;  %p2217_p11 = scmp.lt.u32.totalorder %s2208_s6, %s2467_s8 }
  0x4b   : > { %p2211_p1 = pnand %p2209_p7, %p2854_p12 }
  0x4c   : > { %p2216_p10 = por %p2215_p8, %p2214_p3 }
  0x4d   : > { %p2212_p2 = pneg %p2211_p1 }
  0x4e   : > { %p2218_p9 = por %p2217_p11, %p2216_p10 }
  0x50   : > { %p2219_p13 = pnand %p2218_p9, %p2212_p2 }
  0x52   : > { %2222 = shalt.err (!%p2219_p13)
}
  0x53   : > { %s2223_s28 = scalar_lea.vmem %s2469_s4, 256  ;;  %p2855_p0 = pmov %p2854_p12 }
  0x54   : > { %p2224_p6 = scmp.ne.s32.totalorder %s2469_s4, %s2223_s28  ;;  %s2314_s5 = smov [#allocation7]  }
  0x55   : > { %s2228_s17 = sshll.u32 %s2314_s5, 4  ;;  %s2229_s17 = int_to_ptr.vmem [resolvable:$false] %s2228_s17 }
  0x56   : > { %p2226_p4 = pnand %p2224_p6, %p2855_p0  ;;  %s2230_s18 = scalar_lea.vmem %s2229_s17, 512 }
  0x57   : > { %p2231_p12 = scmp.lt.s32.totalorder %s2469_s4, %s2229_s17  ;;  %p2232_p1 = scmp.lt.s32.totalorder %s2230_s18, %s2223_s28 }
  0x58   : > { %p2227_p7 = pneg %p2226_p4 }
  0x59   : > { %p2233_p3 = por %p2232_p1, %p2231_p12 }
  0x5b   : > { %p2234_p8 = pnand %p2233_p3, %p2227_p7 }
  0x5d   : > { %2237 = shalt.err (!%p2234_p8)
}
  0x5e   : > { %2006 = dma.hbm_to_vmem [thread:$0]  (!%p2853_p5), %s2467_s8, 256, %s2469_s4, %s2404_s30, %s2312_s24, %s2312_s24, %s2313_s21  }
  0x5f   : > { %p2856_p2 = scmp.ne.s32.totalorder %s2851_s27, 0 }
  0x60   : > { %p2857_p10 = scmp.eq.s32.totalorder (!%p2856_p2), %s2435_s25, 0 }
  0x61   : > { %187 = sbr.rel (%p2856_p2) target bundleno = 3107 (0xc23), region = 32 }
  0x68   : > { %2281 = dma.done.wait (%p2857_p10), [#allocation3], 256   ;;  %p2858_p11 = pmov %p2857_p10 }
  0x69   : > { %s193_s23 = sand.u32 1, %s2435_s25   ;;  %s195_s20 = sand.u32 1, %s2298_s13  }
  0x6a   : > { %2283 = vsyncadd (%p2858_p11), [#allocation3], 4294967040  ;;  %s1983_s22 = smul.u32 96, %s195_s20  ;;  %s194_s12 = scalar_lea.sflag [#allocation6], %s193_s23 }
  0x6b   : > { %p2859_p9 = scmp.ne.s32.totalorder %s2850_s26, 0 }
  0x6c   : > { %s2530_s29 = scalar_lea.vmem [#allocation5], %s1983_s22 }
  0x6d   : > { %2285 = dma.done.wait (%p2859_p9), %s194_s12, 1792  }
  0x6e   : > { %2287 = vsyncadd (%p2859_p9), %s194_s12, 4294965504  ;;  %s1739_s30 = sshll.u32 %s195_s20, 4  ;;  %p2860_p5 = scmp.ne.s32.totalorder %s2435_s25, 0 }
  0x6f   : > { %s2536_s27 = scalar_lea.vmem [#allocation7], %s1739_s30  ;;  %v234_v0 = vld [vmem:[#allocation2] sm:$0xff] (!%p2860_p5)  ;;  %vm236_vm0 = vcmask (!%p2860_p5), 261120   ;;  %v235_v1 = vld [vmem:[#allocation2 + $0x8] sm:$0xff] (!%p2860_p5) }
  0x70   : > { %233 = sbr.rel (%p2860_p5) target bundleno = 119 (0x77), region = 48  ;;  %237 = vst.msk [vmem:[#allocation8] sm:$0xff] (!%p2860_p5), %vm236_vm0, %v234_v0  ;;  %238 = vst.msk [vmem:[#allocation8 + $0x8] sm:$0xff] (!%p2860_p5), %vm236_vm0, %v235_v1 }
  0x77 PF: > { %v2540_v2 = vld [vmem:[#allocation8] sm:$0xff]  ;;  %vm249_vm1 = vcmask 261120   ;;  %v2542_v3 = vld [vmem:[#allocation8 + $0x8] sm:$0xff]  ;;  %v2315_v17 = vmov 0.0   ;;  %vm2316_vm2 = vmmov 0   ;;  %s2317_s26 = smov 88  }
  0x78   : > { %v250_v4 = vsel %vm249_vm1, %v2540_v2, 0.0  ;;  %v253_v5 = vsel %vm249_vm1, %v2542_v3, 0.0  ;;  %v2084_v16 = vld [vmem:[%s2530_s29] sm:$0xff]   ;;  %1841 = vmatprep.subr.bf16.mxu0 %v2315_v17  ;;  %1861 = vmatprep.subr.bf16.mxu1 %v2315_v17  ;;  %v2085_v18 = vld [vmem:[%s2530_s29 + $0x8] sm:$0xff]   ;;  %s2318_s4 = smov 96   ;;  %s2319_s8 = smov 112  }
  0x79   : > { %251 = vadd.xlane.f32.xlu0 %v250_v4  ;;  %1842 = vmatpush3.bf16.msra.mxu0 %v2084_v16  ;;  %v1741_v27 = vld [vmem:[%s2536_s27] ss:$0 sm:$0xff]  ;;  %v1742_v31 = vld [vmem:[%s2536_s27 + $0x1] ss:$0 sm:$0xff]  ;;  %v2568_v36 = vld [vmem:[%s2536_s27 + $0x4] ss:$0 sm:$0xff] }
  0x7a   : > { %1845 = vmatprep.mubr.msk.bf16.mxu0 %vm2316_vm2, %v2315_v17  ;;  %1843 = vmatprep.subr.bf16.mxu0 %v2315_v17  ;;  %s2320_s24 = smov 120   ;;  %s2321_s21 = smov 104   ;;  %vm361_vm3 = vcmask 64512   ;;  %vm425_vm5 = vcmask 1043456   ;;  %vm813_vm6 = vcmask 130048   ;;  %vm815_vm7 = vcmask 195584  }
  0x7b   : > { %1863 = vmatprep.mubr.msk.bf16.mxu1 %vm2316_vm2, %v2315_v17  ;;  %s2322_s6 = smov 80   ;;  %s2323_s7 = smov 72  }
  0x7c   : > { %s2324_s9 = smov 56   ;;  %s2326_s10 = smov 64  }
  0x7d   : > { %254 = vadd.xlane.f32.xlu0 %v253_v5  ;;  %1844 = vmatpush3.bf16.msra.mxu0 %v2085_v18  ;;  %s2327_s11 = smov 48   ;;  %s2328_s15 = smov 40  }
  0x7e   : > { %1849 = vmatprep.subr.bf16.mxu0 %v2315_v17  ;;  %s2329_s28 = smov 32   ;;  %s2330_s5 = smov 8  }
  0x7f   : > { %s2331_s17 = smov 16   ;;  %s2332_s18 = smov 24  }
  0x80   : > { %p1782_p13 = scmp.ge.s32.totalorder %s2435_s25, 1 }
 0x106   : > { %v252_v6 = vpop.xlane.xlu0 %251 }
 0x107   : > { %v257_v7 = vmul.f32 0.03125, %v252_v6 }
 0x109   : > { %v259_v8 = vsub.f32 %v2540_v2, %v257_v7 }
 0x10a   : > { %v255_v9 = vpop.xlane.xlu0 %254 }
 0x10b   : > { %v258_v10 = vmul.f32 0.03125, %v255_v9  ;;  %v261_v11 = vmul.f32 %v259_v8, %v259_v8  ;;  %v241_v9 = vlaneseq }
 0x10d   : > { %v260_v12 = vsub.f32 %v2542_v3, %v258_v10  ;;  %v263_v13 = vsel %vm249_vm1, %v261_v11, 0.0  ;;  %v242_v10 = vshrl.u32 %v241_v9, 7  ;;  %v244_v11 = vand.u32 127, %v241_v9 }
 0x10e   : > { %264 = vadd.xlane.f32.xlu1 %v263_v13 }
 0x10f   : > { %v262_v14 = vmul.f32 %v260_v12, %v260_v12  ;;  %vm245_vm4 = vcmp.ge.s32.totalorder %v242_v10, %v244_v11 }
 0x111   : > { %v266_v15 = vsel %vm249_vm1, %v262_v14, 0.0 }
 0x112   : > { %267 = vadd.xlane.f32.xlu1 %v266_v15 }
 0x19b   : > { %v265_v19 = vpop.xlane.xlu1 %264 }
 0x19c   : > { %v269_v20 = vmul.f32 0.03125, %v265_v19 }
 0x19e   : > { %v271_v21 = vadd.f32 1e-05, %v269_v20 }
 0x19f   : > { %v268_v22 = vpop.xlane.xlu1 %267 }
 0x1a0   : > { %2098 = vrsqrt.f32 %v271_v21  ;;  %v270_v23 = vmul.f32 0.03125, %v268_v22 }
 0x1a2   : > { %v272_v24 = vadd.f32 1e-05, %v270_v23 }
 0x1a4   : > { %2100 = vrsqrt.f32 %v272_v24 }
 0x1aa   : > { %v2099_v25 = vpop.eup %2098 }
 0x1ab   : > { %v275_v26 = vmul.f32 %v2099_v25, %v259_v8 }
 0x1ad   : > { %v281_v30 = vmul.f32 %v1741_v27, %v275_v26 }
 0x1ae   : > { %v2101_v28 = vpop.eup %2100 }
 0x1af   : > { %v276_v29 = vmul.f32 %v2101_v28, %v260_v12  ;;  %v287_v33 = vadd.f32 %v1742_v31, %v281_v30  ;;  %v2325_v12 = vmov -1e+09  }
 0x1b0   : > { %v246_v13 = vsel %vm245_vm4, 0.0, %v2325_v12 }
 0x1b1   : > { %v282_v32 = vmul.f32 %v1741_v27, %v276_v29 }
 0x1b3   : > { %v288_v34 = vadd.f32 %v1742_v31, %v282_v32 }
 0x1b5   : > { %v289_v35 = vpack.c.bf16 %v288_v34, %v287_v33 }
 0x1b7   : > { %1846 = vmatmul.mubr.msk.bf16.vlgmr.msra.gmra.mrb[0].mxu0 %vm249_vm1, %v289_v35 }
 0x1b8   : > { %1851 = vmatprep.mubr.msk.bf16.mxu0 %vm2316_vm2, %v2315_v17 }
 0x28a   : > { %v348_v37 = vpop.f32.mrb[0].mxu0 }
 0x28b   : > { %v349_v38 = vadd.f32 %v2568_v36, %v348_v37  ;;  %v1847_v39 = vpop.f32.mrb[1].mxu0 }
 0x28c   : > { %v351_v40 = vpop.f32.mrb[2].mxu0 }
 0x28d   : > { %v355_v41 = vmul.f32 0.35355338, %v349_v38  ;;  %v2571_v42 = vpack.c.bf16 %v349_v38, %v349_v38  ;;  %v1848_v43 = vpop.f32.mrb[3].mxu0  ;;  %v352_v45 = vadd.f32 %v2568_v36, %v351_v40 }
 0x28f   : > { %472 = vrot.lane.b32.xlu1 %v2571_v42, %s2317_s26  ;;  %359 = vrot.lane.b32.xlu0 %v2571_v42, %s2318_s4  ;;  %v356_v44 = vpack.c.bf16 %v355_v41, %v355_v41  ;;  %v2577_v46 = vpack.c.bf16 %v352_v45, %v352_v45  ;;  %v817_v47 = vmul.f32 0.35355338, %v352_v45 }
 0x291   : > { %v818_v48 = vpack.c.bf16 %v817_v47, %v817_v47 }
 0x293   : > { %580 = vrot.lane.b32.xlu0 %v356_v44, %s2319_s8  ;;  %470 = vrot.lane.b32.xlu1 %v356_v44, %s2320_s24 }
 0x297   : > { %690 = vrot.lane.b32.xlu0 %v356_v44, %s2321_s21  ;;  %582 = vrot.lane.b32.xlu1 %v2571_v42, %s2322_s6 }
 0x29b   : > { %692 = vrot.lane.b32.xlu1 %v2571_v42, %s2323_s7  ;;  %932 = vrot.lane.b32.xlu0 %v2577_v46, %s2317_s26 }
 0x29f   : > { %1042 = vrot.lane.b32.xlu0 %v2577_v46, %s2322_s6  ;;  %821 = vrot.lane.b32.xlu1 %v2577_v46, %s2318_s4 }
 0x2a3   : > { %1152 = vrot.lane.b32.xlu0 %v2577_v46, %s2323_s7  ;;  %930 = vrot.lane.b32.xlu1 %v818_v48, %s2320_s24 }
 0x2a7   : > { %1040 = vrot.lane.b32.xlu1 %v818_v48, %s2319_s8 }
 0x2ab   : > { %1150 = vrot.lane.b32.xlu1 %v818_v48, %s2321_s21 }
 0x2af   : > { %532 = vrot.lane.b32.xlu1 %v2571_v42, %s2324_s9 }
 0x301   : > { %v473_v49 = vpop.permute.xlu1 %472  ;;  %v360_v50 = vpop.permute.xlu0 %359 }
 0x302   : > { %v366_v51 = vsel %vm361_vm3, %v360_v50, 0  ;;  %v478_v52 = vsel %vm361_vm3, %v473_v49, 0 }
 0x303   : > { %1850 = vmatpush3.bf16.xpose.msra.mxu0 %v366_v51  ;;  %1862 = vmatpush3.bf16.xpose.msra.mxu1 %v478_v52 }
 0x304   : > { %1873 = vmatprep.subr.bf16.mxu1 %v2315_v17  ;;  %1855 = vmatprep.subr.bf16.mxu0 %v2315_v17 }
 0x305   : > { %v471_v53 = vpop.permute.xlu1 %470  ;;  %v581_v57 = vpop.permute.xlu0 %580 }
 0x309   : > { %v583_v54 = vpop.permute.xlu1 %582  ;;  %v691_v60 = vpop.permute.xlu0 %690 }
 0x30a   : > { %v588_v55 = vsel %vm361_vm3, %v583_v54, 0  ;;  %1852 = vmatmul.mubr.msk.bf16.vlgmr.msra.gmra.mrb[4].mxu0 %vm361_vm3, %v356_v44  ;;  %1864 = vmatmul.mubr.msk.bf16.vlgmr.msra.gmra.mrb[0].mxu1 %vm361_vm3, %v471_v53 }
 0x30b   : > { %1874 = vmatpush3.bf16.xpose.msra.mxu1 %v588_v55  ;;  %1875 = vmatprep.mubr.msk.bf16.mxu1 %vm2316_vm2, %v2315_v17 }
 0x30c   : > { %1885 = vmatprep.subr.bf16.mxu1 %v2315_v17  ;;  %1857 = vmatprep.mubr.msk.bf16.mxu0 %vm2316_vm2, %v2315_v17 }
 0x30d   : > { %v693_v56 = vpop.permute.xlu1 %692  ;;  %v933_v62 = vpop.permute.xlu0 %932 }
 0x30e   : > { %v698_v58 = vsel %vm361_vm3, %v693_v56, 0  ;;  %v938_v63 = vsel %vm361_vm3, %v933_v62, 0 }
 0x311   : > { %v822_v59 = vpop.permute.xlu1 %821  ;;  %v1043_v0 = vpop.permute.xlu0 %1042 }
 0x312   : > { %1876 = vmatmul.mubr.msk.bf16.vlgmr.msra.gmra.mrb[4].mxu1 %vm361_vm3, %v581_v57  ;;  %v827_v61 = vsel %vm361_vm3, %v822_v59, 0  ;;  %v1048_v4 = vsel %vm361_vm3, %v1043_v0, 0 }
 0x313   : > { %1886 = vmatpush3.bf16.xpose.msra.mxu1 %v698_v58  ;;  %1887 = vmatprep.mubr.msk.bf16.mxu1 %vm2316_vm2, %v2315_v17 }
 0x314   : > { %1897 = vmatprep.subr.bf16.mxu1 %v2315_v17 }
 0x315   : > { %v931_v1 = vpop.permute.xlu1 %930  ;;  %v1153_v5 = vpop.permute.xlu0 %1152 }
 0x316   : > { %v1158_v7 = vsel %vm361_vm3, %v1153_v5, 0 }
 0x319   : > { %v1041_v6 = vpop.permute.xlu1 %1040 }
 0x31a   : > { %1888 = vmatmul.mubr.msk.bf16.vlgmr.msra.gmra.mrb[8].mxu1 %vm361_vm3, %v691_v60 }
 0x31b   : > { %1898 = vmatpush3.bf16.xpose.msra.mxu1 %v827_v61  ;;  %1899 = vmatprep.mubr.msk.bf16.mxu1 %vm2316_vm2, %v2315_v17 }
 0x31c   : > { %1909 = vmatprep.subr.bf16.mxu1 %v2315_v17 }
 0x31d   : > { %v1151_v8 = vpop.permute.xlu1 %1150 }
 0x322   : > { %1900 = vmatmul.mubr.msk.bf16.vlgmr.msra.gmra.mrb[12].mxu1 %vm361_vm3, %v818_v48 }
 0x323   : > { %1910 = vmatpush3.bf16.xpose.msra.mxu1 %v938_v63  ;;  %1911 = vmatprep.mubr.msk.bf16.mxu1 %vm2316_vm2, %v2315_v17 }
 0x324   : > { %1921 = vmatprep.subr.bf16.mxu1 %v2315_v17 }
 0x32a   : > { %1912 = vmatmul.mubr.msk.bf16.vlgmr.msra.gmra.mrb[16].mxu1 %vm361_vm3, %v931_v1 }
 0x32b   : > { %1922 = vmatpush3.bf16.xpose.msra.mxu1 %v1048_v4  ;;  %1923 = vmatprep.mubr.msk.bf16.mxu1 %vm2316_vm2, %v2315_v17  ;;  %v2650_v4 = vpop.permute.xlu1 %532 }
 0x32c   : > { %1933 = vmatprep.subr.bf16.mxu1 %v2315_v17 }
 0x332   : > { %1924 = vmatmul.mubr.msk.bf16.vlgmr.msra.gmra.mrb[20].mxu1 %vm361_vm3, %v1041_v6 }
 0x333   : > { %1934 = vmatpush3.bf16.xpose.msra.mxu1 %v1158_v7  ;;  %1935 = vmatprep.mubr.msk.bf16.mxu1 %vm2316_vm2, %v2315_v17 }
 0x334   : > { %1945 = vmatprep.subr.bf16.mxu1 %v2315_v17 }
 0x33a   : > { %1936 = vmatmul.mubr.msk.bf16.vlgmr.msra.gmra.mrb[24].mxu1 %vm361_vm3, %v1151_v8 }
 0x33b   : > { %1949 = vmatprep.mubr.msk.bf16.mxu1 %vm2316_vm2, %v2315_v17 }
 0x3dd   : > { %v402_v14 = vpop.f32.mrb[4].mxu0  ;;  %v514_v15 = vpop.f32.mrb[0].mxu1 }
 0x3de   : > { %v2626_v16 = vadd.f32 %v402_v14, %v246_v13  ;;  %v515_v18 = vadd.f32 %v514_v15, %v246_v13  ;;  %v1853_v19 = vpop.f32.mrb[5].mxu0  ;;  %v1865_v20 = vpop.f32.mrb[1].mxu1 }
 0x3df   : > { %v405_v21 = vpop.f32.mrb[6].mxu0  ;;  %v517_v22 = vpop.f32.mrb[2].mxu1 }
 0x3e0   : > { %v1854_v23 = vpop.f32.mrb[7].mxu0  ;;  %v1866_v24 = vpop.f32.mrb[3].mxu1  ;;  %v520_v25 = vsel %vm361_vm3, %v515_v18, -inf  ;;  %v408_v26 = vsel %vm361_vm3, %v2626_v16, -inf }
 0x3e1   : > { %521 = vmax.xlane.f32.xlu1 %v520_v25  ;;  %409 = vmax.xlane.f32.xlu0 %v408_v26 }
 0x3e5   : > { %v624_v27 = vpop.f32.mrb[4].mxu1 }
 0x3e6   : > { %v1877_v28 = vpop.f32.mrb[5].mxu1  ;;  %v625_v59 = vadd.f32 %v624_v27, %v246_v13 }
 0x3e7   : > { %v627_v29 = vpop.f32.mrb[6].mxu1 }
 0x3e8   : > { %v1878_v30 = vpop.f32.mrb[7].mxu1  ;;  %v630_v61 = vsel %vm361_vm3, %v625_v59, -inf }
 0x3ed   : > { %v734_v31 = vpop.f32.mrb[8].mxu1 }
 0x3ee   : > { %v1889_v32 = vpop.f32.mrb[9].mxu1  ;;  %v735_v60 = vadd.f32 %v734_v31, %v246_v13 }
 0x3ef   : > { %v737_v33 = vpop.f32.mrb[10].mxu1 }
 0x3f0   : > { %v1890_v34 = vpop.f32.mrb[11].mxu1  ;;  %v740_v63 = vsel %vm361_vm3, %v735_v60, -inf }
 0x3f5   : > { %v863_v35 = vpop.f32.mrb[12].mxu1 }
 0x3f6   : > { %v1901_v37 = vpop.f32.mrb[13].mxu1  ;;  %v864_v62 = vadd.f32 %v863_v35, %v246_v13 }
 0x3f7   : > { %v866_v38 = vpop.f32.mrb[14].mxu1  ;;  %420 = vrot.lane.b32.xlu0 %v2571_v42, %s2326_s10 }
 0x3f8   : > { %v1902_v39 = vpop.f32.mrb[15].mxu1  ;;  %v869_v0 = vsel %vm361_vm3, %v864_v62, -inf }
 0x3fd   : > { %v974_v40 = vpop.f32.mrb[16].mxu1 }
 0x3fe   : > { %v2633_v41 = vadd.f32 %v974_v40, %v246_v13  ;;  %v1913_v43 = vpop.f32.mrb[17].mxu1 }
 0x3ff   : > { %v977_v44 = vpop.f32.mrb[18].mxu1 }
 0x400   : > { %v1914_v45 = vpop.f32.mrb[19].mxu1  ;;  %v980_v47 = vsel %vm361_vm3, %v2633_v41, -inf }
 0x401   : > { %981 = vmax.xlane.f32.xlu1 %v980_v47 }
 0x405   : > { %v1084_v48 = vpop.f32.mrb[20].mxu1 }
 0x406   : > { %v2637_v49 = vadd.f32 %v1084_v48, %v246_v13  ;;  %v1925_v50 = vpop.f32.mrb[21].mxu1 }
 0x407   : > { %v1087_v51 = vpop.f32.mrb[22].mxu1 }
 0x408   : > { %v1926_v52 = vpop.f32.mrb[23].mxu1  ;;  %v1090_v1 = vsel %vm361_vm3, %v2637_v49, -inf }
 0x40d   : > { %v1194_v53 = vpop.f32.mrb[24].mxu1 }
 0x40e   : > { %v2639_v54 = vadd.f32 %v1194_v53, %v246_v13  ;;  %v1937_v55 = vpop.f32.mrb[25].mxu1 }
 0x40f   : > { %v1197_v56 = vpop.f32.mrb[26].mxu1 }
 0x410   : > { %v1938_v57 = vpop.f32.mrb[27].mxu1  ;;  %v1200_v58 = vsel %vm361_vm3, %v2639_v54, -inf }
 0x411   : > { %1201 = vmax.xlane.f32.xlu1 %v1200_v58  ;;  %v538_v57 = vsel %vm425_vm5, %v2650_v4, 0 }
 0x416   : > { %631 = vmax.xlane.f32.xlu0 %v630_v61 }
 0x41a   : > { %741 = vmax.xlane.f32.xlu0 %v740_v63 }
 0x41e   : > { %870 = vmax.xlane.f32.xlu0 %v869_v0 }
 0x422   : > { %1091 = vmax.xlane.f32.xlu0 %v1090_v1 }
 0x438   : > { %642 = vrot.lane.b32.xlu0 %v2571_v42, %s2327_s11 }
 0x46e   : > { %v522_v5 = vpop.xlane.xlu1 %521  ;;  %v410_v6 = vpop.xlane.xlu0 %409 }
 0x46f   : > { %v523_v7 = vsub.f32 %v515_v18, %v522_v5  ;;  %v411_v8 = vsub.f32 %v2626_v16, %v410_v6 }
 0x471   : > { %v524_v9 = vmul.f32 1.442695, %v523_v7  ;;  %v412_v10 = vmul.f32 1.442695, %v411_v8 }
 0x472   : > { %v421_v11 = vpop.permute.xlu0 %420 }
 0x473   : > { %2102 = vpow2.f32 %v524_v9  ;;  %v427_v12 = vsel %vm425_vm5, %v421_v11, 0 }
 0x474   : > { %2104 = vpow2.f32 %v412_v10  ;;  %1856 = vmatpush3.bf16.msra.mxu0 %v427_v12 }
 0x475   : > { %1867 = vmatprep.subr.bf16.mxu0 %v2315_v17 }
 0x47d   : > { %v2655_v13 = vpop.eup %2102 }
 0x47e   : > { %v2105_v14 = vpop.eup %2104  ;;  %v526_v15 = vsel %vm361_vm3, %v2655_v13, 0.0 }
 0x47f   : > { %527 = vadd.xlane.f32.xlu1 %v526_v15  ;;  %v414_v16 = vsel %vm361_vm3, %v2105_v14, 0.0 }
 0x480   : > { %415 = vadd.xlane.f32.xlu0 %v414_v16 }
 0x48e   : > { %v982_v21 = vpop.xlane.xlu1 %981 }
 0x48f   : > { %v983_v24 = vsub.f32 %v2633_v41, %v982_v21 }
 0x490   : > { %881 = vrot.lane.b32.xlu1 %v2577_v46, %s2326_s10 }
 0x491   : > { %v984_v28 = vmul.f32 1.442695, %v983_v24 }
 0x49e   : > { %v1202_v43 = vpop.xlane.xlu1 %1201 }
 0x49f   : > { %v1203_v44 = vsub.f32 %v2639_v54, %v1202_v43 }
 0x4a1   : > { %v1204_v45 = vmul.f32 1.442695, %v1203_v44 }
 0x4a3   : > { %v632_v18 = vpop.xlane.xlu0 %631 }
 0x4a4   : > { %v633_v19 = vsub.f32 %v625_v59, %v632_v18 }
 0x4a6   : > { %v634_v20 = vmul.f32 1.442695, %v633_v19 }
 0x4a7   : > { %v742_v22 = vpop.xlane.xlu0 %741 }
 0x4a8   : > { %2106 = vpow2.f32 %v634_v20  ;;  %v743_v23 = vsub.f32 %v735_v60, %v742_v22 }
 0x4aa   : > { %v744_v25 = vmul.f32 1.442695, %v743_v23 }
 0x4ab   : > { %v871_v26 = vpop.xlane.xlu0 %870 }
 0x4ac   : > { %2108 = vpow2.f32 %v744_v25  ;;  %v872_v27 = vsub.f32 %v864_v62, %v871_v26 }
 0x4ae   : > { %v873_v29 = vmul.f32 1.442695, %v872_v27 }
 0x4af   : > { %v1092_v39 = vpop.xlane.xlu0 %1091 }
 0x4b0   : > { %2110 = vpow2.f32 %v873_v29  ;;  %v1093_v40 = vsub.f32 %v2637_v49, %v1092_v39 }
 0x4b1   : > { %2112 = vpow2.f32 %v984_v28 }
 0x4b2   : > { %v2107_v30 = vpop.eup %2106  ;;  %v1094_v41 = vmul.f32 1.442695, %v1093_v40 }
 0x4b3   : > { %v636_v31 = vsel %vm361_vm3, %v2107_v30, 0.0  ;;  %v643_v49 = vpop.permute.xlu0 %642 }
 0x4b4   : > { %637 = vadd.xlane.f32.xlu0 %v636_v31  ;;  %2114 = vpow2.f32 %v1094_v41  ;;  %v648_v59 = vsel %vm425_vm5, %v643_v49, 0 }
 0x4b5   : > { %2116 = vpow2.f32 %v1204_v45 }
 0x4b6   : > { %v2664_v32 = vpop.eup %2108 }
 0x4b7   : > { %v746_v33 = vsel %vm361_vm3, %v2664_v32, 0.0 }
 0x4b8   : > { %747 = vadd.xlane.f32.xlu1 %v746_v33  ;;  %v2086_v33 = vld [vmem:[%s2530_s29] sm:$0xff]  }
 0x4ba   : > { %v2668_v34 = vpop.eup %2110 }
 0x4bb   : > { %v875_v35 = vsel %vm361_vm3, %v2668_v34, 0.0  ;;  %v2672_v37 = vpop.eup %2112 }
 0x4bc   : > { %876 = vadd.xlane.f32.xlu1 %v875_v35  ;;  %v986_v38 = vsel %vm361_vm3, %v2672_v37, 0.0 }
 0x4be   : > { %v2681_v47 = vpop.eup %2114 }
 0x4bf   : > { %v1096_v48 = vsel %vm361_vm3, %v2681_v47, 0.0 }
 0x4c0   : > { %987 = vadd.xlane.f32.xlu1 %v986_v38 }
 0x4ca   : > { %752 = vrot.lane.b32.xlu0 %v2571_v42, %s2328_s15  ;;  %v2685_v42 = vpop.eup %2116 }
 0x4cb   : > { %v1206_v50 = vsel %vm361_vm3, %v2685_v42, 0.0 }
 0x4d1   : > { %992 = vrot.lane.b32.xlu1 %v2577_v46, %s2324_s9 }
 0x4e9   : > { %1097 = vadd.xlane.f32.xlu0 %v1096_v48 }
 0x4f5   : > { %1207 = vadd.xlane.f32.xlu1 %v1206_v50 }
 0x4ff   : > { %1102 = vrot.lane.b32.xlu0 %v2577_v46, %s2327_s11 }
 0x503   : > { %1290 = vrot.lane.b32.xlu0 %v2086_v33, %s2329_s28 }
 0x506   : > { %1212 = vrot.lane.b32.xlu1 %v2577_v46, %s2328_s15 }
 0x50c   : > { %v528_v52 = vpop.xlane.xlu1 %527 }
 0x50d   : > { %v416_v51 = vpop.xlane.xlu0 %415 }
 0x50e   : > { %2118 = vrcp.f32 %v416_v51 }
 0x50f   : > { %2120 = vrcp.f32 %v528_v52 }
 0x510   : > { %v882_v60 = vpop.permute.xlu1 %881 }
 0x511   : > { %v887_v12 = vsel %vm425_vm5, %v882_v60, 0 }
 0x518   : > { %v2119_v53 = vpop.eup %2118 }
 0x519   : > { %v418_v54 = vmul.f32 %v2119_v53, %v2105_v14  ;;  %v2121_v56 = vpop.eup %2120 }
 0x51a   : > { %v530_v46 = vmul.f32 %v2121_v56, %v2655_v13 }
 0x51b   : > { %v419_v55 = vpack.c.bf16 %v418_v54, %v418_v54 }
 0x51c   : > { %v531_v58 = vpack.c.bf16 %v530_v46, %v530_v46 }
 0x51d   : > { %1858 = vmatmul.mubr.msk.bf16.vlgmr.msra.gmra.mrb[8].mxu0 %vm361_vm3, %v419_v55 }
 0x51e   : > { %1868 = vmatpush3.bf16.msra.mxu0 %v538_v57  ;;  %1869 = vmatprep.mubr.msk.bf16.mxu0 %vm2316_vm2, %v2315_v17 }
 0x51f   : > { %1879 = vmatprep.subr.bf16.mxu0 %v2315_v17 }
 0x525   : > { %1870 = vmatmul.mubr.msk.bf16.vlgmr.msra.gmra.mrb[12].mxu0 %vm361_vm3, %v531_v58 }
 0x526   : > { %1880 = vmatpush3.bf16.msra.mxu0 %v648_v59  ;;  %1881 = vmatprep.mubr.msk.bf16.mxu0 %vm2316_vm2, %v2315_v17 }
 0x527   : > { %1891 = vmatprep.subr.bf16.mxu0 %v2315_v17 }
 0x541   : > { %v638_v61 = vpop.xlane.xlu0 %637 }
 0x542   : > { %2122 = vrcp.f32 %v638_v61 }
 0x545   : > { %v748_v62 = vpop.xlane.xlu1 %747  ;;  %v753_v4 = vpop.permute.xlu0 %752 }
 0x546   : > { %2124 = vrcp.f32 %v748_v62  ;;  %v758_v7 = vsel %vm425_vm5, %v753_v4, 0  ;;  %v2087_v4 = vld [vmem:[%s2530_s29 + $0x8] sm:$0xff]  }
 0x549   : > { %v877_v63 = vpop.xlane.xlu1 %876 }
 0x54a   : > { %2126 = vrcp.f32 %v877_v63 }
 0x54c   : > { %v2123_v0 = vpop.eup %2122 }
 0x54d   : > { %v640_v1 = vmul.f32 %v2123_v0, %v2107_v30  ;;  %v988_v9 = vpop.xlane.xlu1 %987 }
 0x54e   : > { %2128 = vrcp.f32 %v988_v9 }
 0x54f   : > { %v641_v5 = vpack.c.bf16 %v640_v1, %v640_v1 }
 0x550   : > { %v2125_v6 = vpop.eup %2124 }
 0x551   : > { %1882 = vmatmul.mubr.msk.bf16.vlgmr.msra.gmra.mrb[16].mxu0 %vm361_vm3, %v641_v5  ;;  %v750_v8 = vmul.f32 %v2125_v6, %v2664_v32  ;;  %v993_v14 = vpop.permute.xlu1 %992 }
 0x552   : > { %1892 = vmatpush3.bf16.msra.mxu0 %v758_v7  ;;  %1893 = vmatprep.mubr.msk.bf16.mxu0 %vm2316_vm2, %v2315_v17  ;;  %v998_v18 = vsel %vm425_vm5, %v993_v14, 0 }
 0x553   : > { %1903 = vmatprep.subr.bf16.mxu0 %v2315_v17  ;;  %v751_v10 = vpack.c.bf16 %v750_v8, %v750_v8 }
 0x554   : > { %v2127_v11 = vpop.eup %2126 }
 0x555   : > { %v879_v13 = vmul.f32 %v2127_v11, %v2668_v34 }
 0x557   : > { %v880_v15 = vpack.c.bf16 %v879_v13, %v879_v13 }
 0x558   : > { %v2129_v16 = vpop.eup %2128 }
 0x559   : > { %1894 = vmatmul.mubr.msk.bf16.vlgmr.msra.gmra.mrb[20].mxu0 %vm361_vm3, %v751_v10  ;;  %v990_v19 = vmul.f32 %v2129_v16, %v2672_v37 }
 0x55a   : > { %1904 = vmatpush3.bf16.msra.mxu0 %v887_v12  ;;  %1905 = vmatprep.mubr.msk.bf16.mxu0 %vm2316_vm2, %v2315_v17 }
 0x55b   : > { %1915 = vmatprep.subr.bf16.mxu0 %v2315_v17  ;;  %v991_v20 = vpack.c.bf16 %v990_v19, %v990_v19 }
 0x561   : > { %1906 = vmatmul.mubr.msk.bf16.vlgmr.msra.gmra.mrb[24].mxu0 %vm361_vm3, %v880_v15 }
 0x562   : > { %1916 = vmatpush3.bf16.msra.mxu0 %v998_v18  ;;  %1917 = vmatprep.mubr.msk.bf16.mxu0 %vm2316_vm2, %v2315_v17 }
 0x563   : > { %1927 = vmatprep.subr.bf16.mxu0 %v2315_v17 }
 0x569   : > { %1918 = vmatmul.mubr.msk.bf16.vlgmr.msra.gmra.mrb[28].mxu0 %vm361_vm3, %v991_v20 }
 0x56a   : > { %1929 = vmatprep.mubr.msk.bf16.mxu0 %vm2316_vm2, %v2315_v17 }
 0x576   : > { %v1098_v21 = vpop.xlane.xlu0 %1097 }
 0x577   : > { %2130 = vrcp.f32 %v1098_v21 }
 0x57a   : > { %v1103_v22 = vpop.permute.xlu0 %1102 }
 0x57b   : > { %v1108_v23 = vsel %vm425_vm5, %v1103_v22, 0 }
 0x57c   : > { %1928 = vmatpush3.bf16.msra.mxu0 %v1108_v23 }
 0x57d   : > { %1939 = vmatprep.subr.bf16.mxu0 %v2315_v17 }
 0x57e   : > { %v1291_v53 = vpop.permute.xlu0 %1290 }
 0x57f   : > { %1946 = vmatpush3.bf16.msra.mxu1 %v1291_v53 }
 0x580   : > { %1947 = vmatprep.subr.bf16.mxu1 %v2315_v17 }
 0x581   : > { %v2131_v24 = vpop.eup %2130 }
 0x582   : > { %v1100_v25 = vmul.f32 %v2131_v24, %v2681_v47  ;;  %v1208_v26 = vpop.xlane.xlu1 %1207 }
 0x583   : > { %2132 = vrcp.f32 %v1208_v26 }
 0x584   : > { %v1101_v27 = vpack.c.bf16 %v1100_v25, %v1100_v25 }
 0x586   : > { %v1213_v28 = vpop.permute.xlu1 %1212  ;;  %1930 = vmatmul.mubr.msk.bf16.vlgmr.msra.gmra.mrb[32].mxu0 %vm361_vm3, %v1101_v27 }
 0x587   : > { %v1218_v29 = vsel %vm425_vm5, %v1213_v28, 0  ;;  %1941 = vmatprep.mubr.msk.bf16.mxu0 %vm2316_vm2, %v2315_v17 }
 0x588   : > { %1940 = vmatpush3.bf16.msra.mxu0 %v1218_v29 }
 0x589   : > { %1953 = vmatprep.subr.bf16.mxu0 %v2315_v17 }
 0x58d   : > { %v2133_v30 = vpop.eup %2132 }
 0x58e   : > { %v1210_v31 = vmul.f32 %v2133_v30, %v2685_v42 }
 0x590   : > { %v1211_v32 = vpack.c.bf16 %v1210_v31, %v1210_v31 }
 0x592   : > { %1942 = vmatmul.mubr.msk.bf16.vlgmr.msra.gmra.mrb[36].mxu0 %vm361_vm3, %v1211_v32 }
 0x593   : > { %1957 = vmatprep.mubr.msk.bf16.mxu0 %vm2316_vm2, %v2315_v17 }
 0x5f0   : > { %v463_v34 = vpop.f32.mrb[8].mxu0 }
 0x5f1   : > { %v1859_v35 = vpop.f32.mrb[9].mxu0 }
 0x5f2   : > { %v466_v37 = vpop.f32.mrb[10].mxu0 }
 0x5f3   : > { %v1860_v38 = vpop.f32.mrb[11].mxu0 }
 0x5f8   : > { %v574_v39 = vpop.f32.mrb[12].mxu0 }
 0x5f9   : > { %v1871_v40 = vpop.f32.mrb[13].mxu0 }
 0x5fa   : > { %v577_v41 = vpop.f32.mrb[14].mxu0 }
 0x5fb   : > { %v1872_v43 = vpop.f32.mrb[15].mxu0 }
 0x624   : > { %v684_v44 = vpop.f32.mrb[16].mxu0 }
 0x625   : > { %v1883_v45 = vpop.f32.mrb[17].mxu0 }
 0x626   : > { %v687_v47 = vpop.f32.mrb[18].mxu0 }
 0x627   : > { %v1884_v48 = vpop.f32.mrb[19].mxu0 }
 0x62c   : > { %v794_v42 = vpop.f32.mrb[20].mxu0 }
 0x62d   : > { %v1895_v50 = vpop.f32.mrb[21].mxu0 }
 0x62e   : > { %v797_v49 = vpop.f32.mrb[22].mxu0  ;;  %v2089_v50 = vld [vmem:[%s2530_s29 + $0x18] sm:$0xff]  }
 0x62f   : > { %v1896_v51 = vpop.f32.mrb[23].mxu0 }
 0x634   : > { %v923_v52 = vpop.f32.mrb[24].mxu0 }
 0x635   : > { %v1907_v54 = vpop.f32.mrb[25].mxu0 }
 0x636   : > { %v926_v55 = vpop.f32.mrb[26].mxu0 }
 0x637   : > { %v1908_v56 = vpop.f32.mrb[27].mxu0 }
 0x63c   : > { %v1034_v57 = vpop.f32.mrb[28].mxu0 }
 0x63d   : > { %v2069_v46 = vpack.i.bf16 %v1034_v57, %v574_v39  ;;  %v1919_v58 = vpop.f32.mrb[29].mxu0 }
 0x63e   : > { %v1037_v59 = vpop.f32.mrb[30].mxu0 }
 0x63f   : > { %2070 = vrot.lane.b32.xlu1 %v2069_v46, %s2330_s5  ;;  %v1920_v60 = vpop.f32.mrb[31].mxu0  ;;  %v1767_v46 = vld [vmem:[%s2536_s27 + $0x2] ss:$0 sm:$0xff] }
 0x659   : > { %v1144_v61 = vpop.f32.mrb[32].mxu0 }
 0x65a   : > { %v2074_v62 = vpack.i.bf16 %v1144_v61, %v684_v44  ;;  %v1931_v63 = vpop.f32.mrb[33].mxu0  ;;  %v1768_v61 = vld [vmem:[%s2536_s27 + $0x3] ss:$0 sm:$0xff] }
 0x65b   : > { %v1147_v0 = vpop.f32.mrb[34].mxu0 }
 0x65c   : > { %2075 = vrot.lane.b32.xlu0 %v2074_v62, %s2331_s17  ;;  %v1932_v1 = vpop.f32.mrb[35].mxu0 }
 0x660   : > { %1292 = vrot.lane.b32.xlu0 %v2087_v4, %s2329_s28  ;;  %v2090_v4 = vld [vmem:[%s2530_s29 + $0x20] sm:$0xff]  }
 0x665   : > { %v1254_v5 = vpop.f32.mrb[36].mxu0 }
 0x666   : > { %v2079_v6 = vpack.i.bf16 %v1254_v5, %v794_v42  ;;  %v1943_v7 = vpop.f32.mrb[37].mxu0  ;;  %v2088_v42 = vld [vmem:[%s2530_s29 + $0x10] sm:$0xff]   ;;  %v2091_v5 = vld [vmem:[%s2530_s29 + $0x28] sm:$0xff]  }
 0x667   : > { %v1257_v8 = vpop.f32.mrb[38].mxu0  ;;  %1954 = vmatpush3.bf16.msra.mxu0 %v2088_v42  ;;  %v2093_v7 = vld [vmem:[%s2530_s29 + $0x38] sm:$0xff]  }
 0x668   : > { %2080 = vrot.lane.b32.xlu1 %v2079_v6, %s2332_s18  ;;  %v1944_v9 = vpop.f32.mrb[39].mxu0  ;;  %1955 = vmatprep.subr.bf16.mxu0 %v2315_v17  ;;  %v2092_v6 = vld [vmem:[%s2530_s29 + $0x30] sm:$0xff]   ;;  %v2094_v8 = vld [vmem:[%s2530_s29 + $0x40] sm:$0xff]  }
 0x669   : > { %v2095_v9 = vld [vmem:[%s2530_s29 + $0x48] sm:$0xff]  }
 0x66b   : > { %1956 = vmatpush3.bf16.msra.mxu0 %v2089_v50 }
 0x66c   : > { %1348 = vrot.lane.b32.xlu1 %v2568_v36, %s2329_s28 }
 0x6b1   : > { %v2071_v12 = vpop.permute.xlu1 %2070 }
 0x6b2   : > { %v2073_v13 = vunpack.i.h.bf16 %v2071_v12  ;;  %v2072_v14 = vunpack.i.l.bf16 %v2071_v12  ;;  %v1769_v12 = vld [vmem:[%s2536_s27 + $0x5] ss:$0 sm:$0xff] }
 0x6b4   : > { %v1272_v19 = vsel %vm361_vm3, %v923_v52, %v2073_v13  ;;  %v812_v20 = vsel %vm361_vm3, %v463_v34, %v2072_v14 }
 0x6ce   : > { %v2076_v10 = vpop.permute.xlu0 %2075 }
 0x6cf   : > { %v2078_v15 = vunpack.i.h.bf16 %v2076_v10  ;;  %v2077_v16 = vunpack.i.l.bf16 %v2076_v10  ;;  %v2096_v10 = vld [vmem:[%s2530_s29 + $0x50] sm:$0xff]  }
 0x6d1   : > { %v1273_v36 = vsel %vm813_vm6, %v1272_v19, %v2078_v15  ;;  %v814_v23 = vsel %vm813_vm6, %v812_v20, %v2077_v16 }
 0x6d2   : > { %v1293_v11 = vpop.permute.xlu0 %1292 }
 0x6d3   : > { %1948 = vmatpush3.bf16.msra.mxu1 %v1293_v11  ;;  %v2097_v11 = vld [vmem:[%s2530_s29 + $0x58] sm:$0xff]  }
 0x6d4   : > { %1961 = vmatprep.subr.bf16.mxu1 %v2315_v17 }
 0x6da   : > { %v2081_v18 = vpop.permute.xlu1 %2080 }
 0x6db   : > { %v2083_v21 = vunpack.i.h.bf16 %v2081_v18  ;;  %v2082_v22 = vunpack.i.l.bf16 %v2081_v18 }
 0x6dd   : > { %v1274_v24 = vsel %vm815_vm7, %v1273_v36, %v2083_v21  ;;  %v816_v25 = vsel %vm815_vm7, %v814_v23, %v2082_v22 }
 0x6de   : > { %v1275_v26 = vpack.c.bf16 %v1274_v24, %v816_v25  ;;  %v1349_v28 = vpop.permute.xlu1 %1348 }
 0x6e0   : > { %1950 = vmatmul.mubr.msk.bf16.vlgmr.msra.gmra.mrb[28].mxu1 %vm249_vm1, %v1275_v26 }
 0x6e1   : > { %1977 = vmatprep.mubr.msk.bf16.mxu1 %vm2316_vm2, %v2315_v17  ;;  %1962 = vmatpush3.bf16.msra.mxu1 %v2090_v4 }
 0x6e2   : > { %1963 = vmatprep.subr.bf16.mxu1 %v2315_v17 }
 0x6e5   : > { %1964 = vmatpush3.bf16.msra.mxu1 %v2091_v5 }
 0x6e6   : > { %1965 = vmatprep.subr.bf16.mxu1 %v2315_v17 }
 0x6e9   : > { %1966 = vmatpush3.bf16.msra.mxu1 %v2092_v6 }
 0x6ea   : > { %1967 = vmatprep.subr.bf16.mxu1 %v2315_v17 }
 0x6ed   : > { %1968 = vmatpush3.bf16.msra.mxu1 %v2093_v7 }
 0x6ee   : > { %1969 = vmatprep.subr.bf16.mxu1 %v2315_v17 }
 0x6f1   : > { %1970 = vmatpush3.bf16.msra.mxu1 %v2094_v8 }
 0x6f2   : > { %1971 = vmatprep.subr.bf16.mxu1 %v2315_v17 }
 0x6f5   : > { %1972 = vmatpush3.bf16.msra.mxu1 %v2095_v9 }
 0x6f6   : > { %1973 = vmatprep.subr.bf16.mxu1 %v2315_v17 }
 0x6f9   : > { %1974 = vmatpush3.bf16.msra.mxu1 %v2096_v10 }
 0x6fa   : > { %1975 = vmatprep.subr.bf16.mxu1 %v2315_v17 }
 0x6fd   : > { %1976 = vmatpush3.bf16.msra.mxu1 %v2097_v11 }
 0x7b3   : > { %v1333_v27 = vpop.f32.mrb[28].mxu1 }
 0x7b4   : > { %v1340_v29 = vadd.f32 %v1333_v27, %v2540_v2  ;;  %v1951_v30 = vpop.f32.mrb[29].mxu1 }
 0x7b5   : > { %v1336_v31 = vpop.f32.mrb[30].mxu1 }
 0x7b6   : > { %v2752_v32 = vadd.f32 %v1349_v28, %v1340_v29  ;;  %v1341_v33 = vadd.f32 %v1336_v31, %v2542_v3  ;;  %v1952_v34 = vpop.f32.mrb[31].mxu1 }
 0x7b8   : > { %v2755_v35 = vadd.f32 %v1349_v28, %v1341_v33  ;;  %v1355_v37 = vsel %vm249_vm1, %v2752_v32, 0.0  ;;  %v1781_v33 = vld [vmem:[%s2536_s27 + $0x6] ss:$0 sm:$0xff] }
 0x7b9   : > { %1356 = vadd.xlane.f32.xlu0 %v1355_v37 }
 0x7ba   : > { %v1358_v38 = vsel %vm249_vm1, %v2755_v35, 0.0 }
 0x7bb   : > { %1359 = vadd.xlane.f32.xlu1 %v1358_v38 }
 0x846   : > { %v1357_v2 = vpop.xlane.xlu0 %1356 }
 0x847   : > { %v1361_v39 = vmul.f32 0.03125, %v1357_v2 }
 0x848   : > { %v1360_v40 = vpop.xlane.xlu1 %1359 }
 0x849   : > { %v1363_v41 = vsub.f32 %v2752_v32, %v1361_v39  ;;  %v1362_v43 = vmul.f32 0.03125, %v1360_v40 }
 0x84b   : > { %v1364_v3 = vsub.f32 %v2755_v35, %v1362_v43  ;;  %v1365_v44 = vmul.f32 %v1363_v41, %v1363_v41 }
 0x84d   : > { %v1367_v45 = vsel %vm249_vm1, %v1365_v44, 0.0  ;;  %v1366_v47 = vmul.f32 %v1364_v3, %v1364_v3 }
 0x84e   : > { %1368 = vadd.xlane.f32.xlu0 %v1367_v45 }
 0x84f   : > { %v1370_v48 = vsel %vm249_vm1, %v1366_v47, 0.0 }
 0x852   : > { %1371 = vadd.xlane.f32.xlu0 %v1370_v48 }
 0x8db   : > { %v1369_v49 = vpop.xlane.xlu0 %1368 }
 0x8dc   : > { %v1373_v51 = vmul.f32 0.03125, %v1369_v49 }
 0x8de   : > { %v1375_v52 = vadd.f32 1e-05, %v1373_v51 }
 0x8df   : > { %v1372_v53 = vpop.xlane.xlu0 %1371 }
 0x8e0   : > { %2134 = vrsqrt.f32 %v1375_v52  ;;  %v1374_v54 = vmul.f32 0.03125, %v1372_v53 }
 0x8e2   : > { %v1376_v55 = vadd.f32 1e-05, %v1374_v54 }
 0x8e4   : > { %2136 = vrsqrt.f32 %v1376_v55 }
 0x8ea   : > { %v2135_v56 = vpop.eup %2134 }
 0x8eb   : > { %v1379_v57 = vmul.f32 %v2135_v56, %v1363_v41 }
 0x8ed   : > { %v1385_v59 = vmul.f32 %v1767_v46, %v1379_v57 }
 0x8ee   : > { %v2137_v58 = vpop.eup %2136 }
 0x8ef   : > { %v1380_v60 = vmul.f32 %v2137_v58, %v1364_v3  ;;  %v1391_v63 = vadd.f32 %v1768_v61, %v1385_v59 }
 0x8f1   : > { %v1386_v62 = vmul.f32 %v1767_v46, %v1380_v60 }
 0x8f3   : > { %v1392_v0 = vadd.f32 %v1768_v61, %v1386_v62 }
 0x8f5   : > { %v1393_v1 = vpack.c.bf16 %v1392_v0, %v1391_v63 }
 0x8f7   : > { %1958 = vmatmul.mubr.msk.bf16.vlgmr.msra.gmra.mrb[40].mxu0 %vm249_vm1, %v1393_v1 }
 0x9ca   : > { %v1452_v13 = vpop.f32.mrb[40].mxu0 }
 0x9cb   : > { %v1453_v14 = vadd.f32 %v1769_v12, %v1452_v13  ;;  %v1959_v15 = vpop.f32.mrb[41].mxu0 }
 0x9cc   : > { %v1455_v16 = vpop.f32.mrb[42].mxu0 }
 0x9cd   : > { %v1459_v18 = vmul.f32 -1.702, %v1453_v14  ;;  %v1456_v19 = vadd.f32 %v1769_v12, %v1455_v16  ;;  %v1960_v20 = vpop.f32.mrb[43].mxu0 }
 0x9cf   : > { %v1461_v21 = vmul.f32 1.442695, %v1459_v18  ;;  %v1460_v22 = vmul.f32 -1.702, %v1456_v19 }
 0x9d1   : > { %2138 = vpow2.f32 %v1461_v21  ;;  %v1463_v36 = vmul.f32 1.442695, %v1460_v22 }
 0x9d3   : > { %2140 = vpow2.f32 %v1463_v36 }
 0x9db   : > { %v2139_v23 = vpop.eup %2138 }
 0x9dc   : > { %v1465_v24 = vadd.f32 1.0, %v2139_v23 }
 0x9dd   : > { %v2141_v25 = vpop.eup %2140 }
 0x9de   : > { %2142 = vrcp.f32 %v1465_v24  ;;  %v1466_v17 = vadd.f32 1.0, %v2141_v25 }
 0x9e0   : > { %2144 = vrcp.f32 %v1466_v17 }
 0x9e8   : > { %v2143_v26 = vpop.eup %2142 }
 0x9e9   : > { %v1469_v28 = vmul.f32 %v2143_v26, %v1453_v14 }
 0x9ea   : > { %v2145_v27 = vpop.eup %2144 }
 0x9eb   : > { %v1470_v29 = vmul.f32 %v2145_v27, %v1456_v19 }
 0x9ed   : > { %v1471_v30 = vpack.c.bf16 %v1470_v29, %v1469_v28 }
 0x9ef   : > { %1978 = vmatmul.mubr.bf16.vlgmr.msra.gmra.mrb[32].mxu1 %v1471_v30 }
 0xac1   : > { %1589 = sbr.rel (%p1782_p13) target bundleno = 2762 (0xaca), region = 52 }
 0xac2   : > { %v1570_v31 = vpop.f32.mrb[32].mxu1 }
 0xac3   : > { %v1577_v34 = vadd.f32 %v1570_v31, %v2752_v32  ;;  %v1979_v37 = vpop.f32.mrb[33].mxu1 }
 0xac4   : > { %v1573_v38 = vpop.f32.mrb[34].mxu1 }
 0xac5   : > { %v1584_v2 = vadd.f32 %v1781_v33, %v1577_v34  ;;  %v1578_v39 = vadd.f32 %v1573_v38, %v2755_v35  ;;  %v1980_v40 = vpop.f32.mrb[35].mxu1 }
 0xac7   : > { %v1585_v41 = vadd.f32 %v1781_v33, %v1578_v39  ;;  %1590 = vst.msk [vmem:[#allocation8] sm:$0xff] (!%p1782_p13), %vm249_vm1, %v1584_v2 }
 0xac9   : > { %1591 = vst.msk [vmem:[#allocation8 + $0x8] sm:$0xff] %vm249_vm1, %v1585_v41 }
 0xaca PF: > { %p1783_p6 = scmp.ne.s32.totalorder %s2435_s25, 1 }
 0xacb   : > { %v1598_v32 = vsel (!%p1783_p6), %vm249_vm1, %v1584_v2, 0.0  ;;  %v1601_v43 = vsel (!%p1783_p6), %vm249_vm1, %v1585_v41, 0.0  ;;  %v1784_v58 = vld [vmem:[%s2536_s27 + $0x7] ss:$0 sm:$0xff] (!%p1783_p6)  ;;  %v1785_v60 = vld [vmem:[%s2536_s27 + $0x8] ss:$0 sm:$0xff] (!%p1783_p6) }
 0xacc   : > { %1595 = sbr.rel (%p1783_p6) target bundleno = 3081 (0xc09), region = 56  ;;  %1599 = vadd.xlane.f32.xlu0 (!%p1783_p6), %v1598_v32 }
 0xad0   : > { %1602 = vadd.xlane.f32.xlu0 (!%p1783_p6), %v1601_v43 }
 0xb59   : > { %v1600_v35 = vpop.xlane.xlu0 %1599 }
 0xb5a   : > { %v1604_v3 = vmul.f32 0.03125, %v1600_v35 }
 0xb5c   : > { %v1606_v44 = vsub.f32 %v1584_v2, %v1604_v3 }
 0xb5d   : > { %v1603_v45 = vpop.xlane.xlu0 %1602 }
 0xb5e   : > { %v1605_v47 = vmul.f32 0.03125, %v1603_v45  ;;  %v1608_v48 = vmul.f32 %v1606_v44, %v1606_v44 }
 0xb60   : > { %v1607_v42 = vsub.f32 %v1585_v41, %v1605_v47  ;;  %v1610_v50 = vsel %vm249_vm1, %v1608_v48, 0.0 }
 0xb61   : > { %1611 = vadd.xlane.f32.xlu1 %v1610_v50 }
 0xb62   : > { %v1609_v49 = vmul.f32 %v1607_v42, %v1607_v42 }
 0xb64   : > { %v1613_v51 = vsel %vm249_vm1, %v1609_v49, 0.0 }
 0xb65   : > { %1614 = vadd.xlane.f32.xlu1 %v1613_v51 }
 0xbee   : > { %v1612_v52 = vpop.xlane.xlu1 %1611 }
 0xbef   : > { %v1616_v53 = vmul.f32 0.03125, %v1612_v52 }
 0xbf1   : > { %v1618_v54 = vadd.f32 1e-05, %v1616_v53 }
 0xbf2   : > { %v1615_v55 = vpop.xlane.xlu1 %1614 }
 0xbf3   : > { %2146 = vrsqrt.f32 %v1618_v54  ;;  %v1617_v56 = vmul.f32 0.03125, %v1615_v55 }
 0xbf5   : > { %v1619_v57 = vadd.f32 1e-05, %v1617_v56 }
 0xbf7   : > { %2148 = vrsqrt.f32 %v1619_v57 }
 0xbfd   : > { %v2147_v46 = vpop.eup %2146 }
 0xbfe   : > { %v1622_v59 = vmul.f32 %v2147_v46, %v1606_v44 }
 0xc00   : > { %v1628_v61 = vmul.f32 %v1784_v58, %v1622_v59 }
 0xc01   : > { %v2149_v62 = vpop.eup %2148 }
 0xc02   : > { %v1634_v63 = vadd.f32 %v1785_v60, %v1628_v61  ;;  %v1623_v0 = vmul.f32 %v2149_v62, %v1607_v42 }
 0xc04   : > { %1636 = vst.msk [vmem:[#allocation8] sm:$0xff] %vm249_vm1, %v1634_v63  ;;  %v1629_v1 = vmul.f32 %v1784_v58, %v1623_v0 }
 0xc06   : > { %v1635_v4 = vadd.f32 %v1785_v60, %v1629_v1 }
 0xc08   : > { %1637 = vst.msk [vmem:[#allocation8 + $0x8] sm:$0xff] %vm249_vm1, %v1635_v4 }
 0xc09 PF: > { %p2010_p0 = scmp.eq.s32.totalorder %s2435_s25, 1  ;;  %s2333_s23 = smov [#allocation8]  }
 0xc0a   : > { %s1644_s20 = sshll.u32 %s2333_s23, 4  ;;  %s1645_s20 = int_to_ptr.vmem [resolvable:$true] %s1644_s20 }
 0xc0b   : > { %s2238_s22 = scalar_lea.vmem %s1645_s20, 256  ;;  %p2245_p1 = scmp.lt.s32.totalorder %s1645_s20, %s1645_s20 }
 0xc0c   : > { %p2239_p4 = scmp.ne.s32.totalorder %s1645_s20, %s2238_s22  ;;  %p2246_p3 = scmp.lt.s32.totalorder %s2238_s22, %s2238_s22 }
 0xc0e   : > { %p2240_p7 = pnand %p2239_p4, %p2010_p0  ;;  %p2247_p8 = por %p2246_p3, %p2245_p1 }
 0xc10   : > { %p2241_p12 = pneg %p2240_p7 }
 0xc12   : > { %p2248_p2 = pnand %p2247_p8, %p2241_p12 }
 0xc14   : > { %2251 = shalt.err (!%p2248_p2)
}
 0xc15   : > { %s2252_s30 = scalar_lea.hbm %s2842_s3, 256 }
 0xc16   : > { %p2253_p10 = scmp.ne.s32.totalorder %s2842_s3, %s2252_s30  ;;  %p2258_p5 = scmp.lt.u32.totalorder %s2252_s30, %s2842_s3 }
 0xc18   : > { %p2254_p11 = pnand %p2253_p10, %p2010_p0 }
 0xc1a   : > { %p2255_p9 = pneg %p2254_p11 }
 0xc1c   : > { %p2260_p13 = pnand %p2258_p5, %p2255_p9 }
 0xc1e   : > { %2263 = shalt.err (!%p2260_p13)
}
 0xc1f   : > { %s2334_s24 = smov 128  }
 0xc20   : > { %1993 = dma.vmem_to_hbm [thread:$0]  (%p2010_p0), %s1645_s20, 256, %s2842_s3, [#allocation4], %s2334_s24, %s2334_s24, %s2330_s5  }
 0xc21   : > { %2289 = dma.done.wait (%p2010_p0), [#allocation4], 256  }
 0xc22   : > { %2291 = vsyncadd (%p2010_p0), [#allocation4], 4294967040 }
 0xc23 PF: > { %p15_p6 = scmp.ge.s32.totalorder %s2376_s16, 4   ;;  %s2861_s12 = smov %s2298_s13 }
 0xc24   : > { %s2862_s13 = smov %s2302_s14  ;;  %s2863_s14 = smov %s2386_s19 }
 0xc25   : > { %s2864_s15 = smov %s2376_s16  ;;  %17 = sbr.rel (!%p15_p6) target bundleno = 5 (0x5), region = 97 }
 0xc2c   :  { %1660 = vsyncpa [#allocation3], 1 }
 0xc2d   :  { %1662 = vsyncpa [#allocation3 + $0x1], 1 }
 0xc2e   :  { %1663 = vsyncpa [#allocation6], 1 }
 0xc2f   :  { %1665 = vsyncpa [#allocation6 + $0x1], 1 }
 0xc30   :  { %1666 = vsyncpa [#allocation4], 1 }
 0xc31   :  { %1668 = vsyncpa [#allocation4 + $0x1], 1 }

</bundles_post_ra>
